<compile_context>
chip_gen: v7x
topology: tpu7x:2x2x1
jax: 0.10.0
libtpu: 0.0.40
codegen_flags: <defaults>
</compile_context>

<pallas_src>
import functools

import jax
import jax.numpy as jnp
from jax import lax
from jax.experimental import pallas as pl
from jax.experimental.pallas import tpu as pltpu


# ---------------- quaternion / SO3 helpers (elementwise, shape-polymorphic) ----------------------


def _quat_mul(x1, y1, z1, w1, x2, y2, z2, w2):
    # Hamilton product, xyzw storage (pypose SO3 composition: R(q1 q2) = R(q1) R(q2)).
    x = w1 * x2 + x1 * w2 + y1 * z2 - z1 * y2
    y = w1 * y2 - x1 * z2 + y1 * w2 + z1 * x2
    z = w1 * z2 + x1 * y2 - y1 * x2 + z1 * w2
    w = w1 * w2 - x1 * x2 - y1 * y2 - z1 * z2
    return x, y, z, w


def _quat_rotate(qx, qy, qz, qw, vx, vy, vz):
    # R(q) v for a unit quaternion q = (u, w):  v + 2w (u x v) + 2 u x (u x v)
    tx = 2.0 * (qy * vz - qz * vy)
    ty = 2.0 * (qz * vx - qx * vz)
    tz = 2.0 * (qx * vy - qy * vx)
    rx = vx + qw * tx + (qy * tz - qz * ty)
    ry = vy + qw * ty + (qz * tx - qx * tz)
    rz = vz + qw * tz + (qx * ty - qy * tx)
    return rx, ry, rz


def _so3_exp(wx, wy, wz, use_approx_recip=False):
    # Exp map so3 -> unit quaternion (xyzw), Taylor-safe for small angles.
    t2 = wx * wx + wy * wy + wz * wz
    t = jnp.sqrt(t2)
    half = 0.5 * t
    eps = jnp.float32(1e-8)
    small = t < 1e-4
    tsafe = jnp.maximum(t, eps)
    if use_approx_recip:
        inv_t = pl.reciprocal(tsafe, approx=True)   # EUP slot, free next to the VALU work
    else:
        inv_t = 1.0 / tsafe
    sin_ratio = jnp.where(small, 0.5 - t2 / 48.0, jnp.sin(half) * inv_t)
    c = jnp.cos(half)
    return sin_ratio * wx, sin_ratio * wy, sin_ratio * wz, c


def _so3_log_sq(rx, ry, rz, rw):
    # squared norm of Log(q) per element (q in xyzw), with w>=0 handling + small-angle Taylor.
    vn2 = rx * rx + ry * ry + rz * rz
    vn = jnp.sqrt(vn2)
    sgn = jnp.where(rw < 0.0, jnp.float32(-1.0), jnp.float32(1.0))
    wpos = rw * sgn
    eps = jnp.float32(1e-8)
    angle = 2.0 * jnp.arctan2(vn, wpos)
    wsafe = jnp.maximum(wpos, eps)
    scale = jnp.where(vn < 1e-6,
                      2.0 / wsafe - 2.0 * vn2 / (3.0 * wsafe * wsafe * wsafe),
                      angle / jnp.maximum(vn, eps))
    return scale * scale * vn2


# ------------------------------------- kernel ---------------------------------------------------


def _imu_fwd_kernel(gravity,
                    ts_ref, ab_ref, gb_ref, init_ref, pq_ref, pt_ref, sync_ref,
                    out_ref):
    n_pad = ts_ref.shape[1]          # padded step count (multiple of 128, >= N+1), on lanes
    m = pq_ref.shape[0]              # number of reference poses

    # ---- loads (everything small; time series is lane-dense (8, n_pad)) ------------------------
    ts = ts_ref[...]                                   # rows: [dt, ax,ay,az, gx,gy,gz, cum_dt]
    dt = ts[0:1, :]
    ax, ay, az = ts[1:2, :], ts[2:3, :], ts[3:4, :]
    gx, gy, gz = ts[4:5, :], ts[5:6, :], ts[6:7, :]
    tcum = ts[7:8, :]                                  # cumulative time T_i (inclusive)

    ab = ab_ref[...]                                   # (1, 3)
    gb = gb_ref[...]                                   # (1, 3)
    init = init_ref[...]                               # (1, 10)
    qx0, qy0, qz0, qw0 = init[:, 0:1], init[:, 1:2], init[:, 2:3], init[:, 3:4]
    px0, py0, pz0 = init[:, 4:5], init[:, 5:6], init[:, 6:7]
    vx0, vy0, vz0 = init[:, 7:8], init[:, 8:9], init[:, 9:10]

    # ---- full-width pre-pass: per-step SO3 Exp of gyro increments ------------------------------
    # padded lanes have dt = 0 -> identity dq, so they are exact no-ops in the prefix products.
    thx = (gx - gb[:, 0:1]) * dt
    thy = (gy - gb[:, 1:2]) * dt
    thz = (gz - gb[:, 2:3]) * dt
    dqx, dqy, dqz, dqw = _so3_exp(thx, thy, thz, use_approx_recip=True)   # (1, n_pad) each

    lane = lax.broadcasted_iota(jnp.int32, (1, n_pad), 1)

    def shift_right(cx, cy, cz, cw, d):
        # result lane i = operand lane (i - d); lanes < d filled with the identity quaternion.
        keep = lane >= d
        sx = jnp.where(keep, pltpu.roll(cx, d, 1), 0.0)
        sy = jnp.where(keep, pltpu.roll(cy, d, 1), 0.0)
        sz = jnp.where(keep, pltpu.roll(cz, d, 1), 0.0)
        sw = jnp.where(keep, pltpu.roll(cw, d, 1), 1.0)
        return sx, sy, sz, sw

    # exclusive sequence e_k = dq_{k-1}, e_0 = identity, then a Hillis-Steele inclusive scan of
    # quaternion products (earlier element composed on the LEFT) -> log2(n_pad) full-width passes.
    ex, ey, ez, ew = shift_right(dqx, dqy, dqz, dqw, 1)
    d = 1
    while d < n_pad:
        sx, sy, sz, sw = shift_right(ex, ey, ez, ew, d)
        ex, ey, ez, ew = _quat_mul(sx, sy, sz, sw, ex, ey, ez, ew)
        d *= 2

    # start-of-interval rotations q_k = q0 * prod_{i<k} dq_i; one exact normalize after the scan.
    qsx, qsy, qsz, qsw = _quat_mul(qx0, qy0, qz0, qw0, ex, ey, ez, ew)
    inv_n = lax.rsqrt(qsx * qsx + qsy * qsy + qsz * qsz + qsw * qsw)
    qsx, qsy, qsz, qsw = qsx * inv_n, qsy * inv_n, qsz * inv_n, qsw * inv_n

    # ---- full-width post-pass: world-frame accelerations ---------------------------------------
    bax = ax - ab[:, 0:1]
    bay = ay - ab[:, 1:2]
    baz = az - ab[:, 2:3]
    rax, ray, raz = _quat_rotate(qsx, qsy, qsz, qsw, bax, bay, baz)
    raz = raz - gravity                                # world gravity = (0, 0, -g)

    a_x = rax * dt                                     # per-step velocity increments ra*dt
    a_y = ray * dt
    a_z = raz * dt

    # RHS built in registers (no scratch, no column stores): rows [ra*dt(3), ra*dt^2(3), q(4)]
    rhs = jnp.concatenate([a_x, a_y, a_z,
                           a_x * dt, a_y * dt, a_z * dt,
                           qsx, qsy, qsz, qsw], axis=0)            # (10, n_pad)

    # ---- masks + ONE fused MXU matmul (prefix sums + q_{sync+1} gather) ------------------------
    sync = sync_ref[...]                               # (m, 1) int32
    col = lax.broadcasted_iota(jnp.int32, (m, n_pad), 1)
    one = jnp.float32(1.0)
    zero = jnp.float32(0.0)
    mask_le = jnp.where(col <= sync, one, zero)        # i <= sync[m]
    mask_eq = jnp.where(col == sync + 1, one, zero)    # selects q_{sync+1} = rot after sample sync
    t_s = jnp.sum(mask_le * dt, axis=1, keepdims=True)              # (m, 1) = cum. time at sync
    weight_le = mask_le * (t_s - tcum)                               # (T_s - T_i) for i <= sync

    lhs = jnp.concatenate([mask_le, weight_le, mask_eq], axis=0)     # (3m, n_pad)
    prods = lax.dot_general(lhs, rhs, (((1,), (1,)), ((), ())),
                            preferred_element_type=jnp.float32)      # (3m, 10), single MXU call

    ssum2 = prods[0:m, 3:6]            # sum_{i<=s} ra_i dt_i^2
    wsum = prods[m:2 * m, 0:3]         # sum_{i<=s} (T_s - T_i) ra_i dt_i
    qsync = prods[2 * m:3 * m, 6:10]   # q_{sync+1}

    # P_s = p0 + v0*T_s + sum (T_s - T_i) ra dt + 0.5 * sum ra dt^2
    gpx = px0 + vx0 * t_s + wsum[:, 0:1] + 0.5 * ssum2[:, 0:1]
    gpy = py0 + vy0 * t_s + wsum[:, 1:2] + 0.5 * ssum2[:, 1:2]
    gpz = pz0 + vz0 * t_s + wsum[:, 2:3] + 0.5 * ssum2[:, 2:3]

    gqx, gqy, gqz, gqw = qsync[:, 0:1], qsync[:, 1:2], qsync[:, 2:3], qsync[:, 3:4]

    # ------------------ rotation error:  ||Log(pose_rot.Inv() @ int_rot[sync])||_F ---------------
    pq = pq_ref[...]                                   # (m, 4) xyzw
    rx, ry, rz, rw = _quat_mul(-pq[:, 0:1], -pq[:, 1:2], -pq[:, 2:3], pq[:, 3:4],
                               gqx, gqy, gqz, gqw)
    log_sq = _so3_log_sq(rx, ry, rz, rw)               # (m, 1)
    roterr = jnp.sqrt(jnp.sum(log_sq, axis=0, keepdims=True))                 # (1, 1)

    # ------------------ translation error: MSE(pose_t, int_pos[sync]) ---------------------------
    pt = pt_ref[...]                                   # (m, 3)
    dpx = pt[:, 0:1] - gpx
    dpy = pt[:, 1:2] - gpy
    dpz = pt[:, 2:3] - gpz
    transerr = (jnp.sum(dpx * dpx + dpy * dpy + dpz * dpz, axis=0, keepdims=True)
                / jnp.float32(3.0 * m))                                       # (1, 1)

    out_ref[...] = (roterr + transerr).astype(out_ref.dtype)


# ------------------------------------- wrapper ---------------------------------------------------


def _round_up(x, mult):
    return (x + mult - 1) // mult * mult


def imu_fwd(dts, accels, gyros, accel_bias, gyro_bias, init_state,
            poses_q, poses_t, sync, gravity):
    """Scalar loss, matching IMUFwd.forward(poses, sync)."""
    f32 = jnp.float32
    accels = jnp.asarray(accels, f32)
    gyros = jnp.asarray(gyros, f32)
    dts = jnp.asarray(dts, f32).reshape(-1, 1)
    n = accels.shape[0]
    if dts.shape[0] < n:                                # same padding as IMUFwd.__init__
        dts = jnp.concatenate([dts, jnp.zeros((n - dts.shape[0], 1), f32)], axis=0)
    dts = dts[:n]

    # pad the sequence so padded steps are exact no-ops (dt = 0 -> identity dq, zero increments);
    # n_pad >= n + 1 so the "state after the last sample" lane always exists, and a 128-multiple
    # keeps the lane (time) axis dense for the VPU passes and the MXU contraction.
    n_pad = _round_up(n + 1, 128)
    pad = n_pad - n
    dt_p = jnp.pad(dts, ((0, pad), (0, 0)))
    acc_p = jnp.pad(accels, ((0, pad), (0, 0)))
    gyr_p = jnp.pad(gyros, ((0, pad), (0, 0)))
    tcum = jnp.cumsum(dt_p, axis=0)                     # cumulative time; dts are constants
    # lane-dense packing: time on the LAST (lane) axis -> (8, n_pad)
    ts = jnp.concatenate([dt_p, acc_p, gyr_p, tcum], axis=1).T

    vmem = pl.BlockSpec(memory_space=pltpu.MemorySpace.VMEM)
    kernel = functools.partial(_imu_fwd_kernel, float(gravity))
    out = pl.pallas_call(
        kernel,
        out_shape=jax.ShapeDtypeStruct((1, 1), f32),
        in_specs=[vmem] * 7,
        out_specs=vmem,
    )(ts,
      accel_bias.reshape(1, 3).astype(f32),
      gyro_bias.reshape(1, 3).astype(f32),
      init_state.reshape(1, 10).astype(f32),
      poses_q.astype(f32),
      poses_t.astype(f32),
      sync.reshape(-1, 1).astype(jnp.int32))
    return out[0, 0]


# ------------------------- pure-JAX sequential reference (for validation) ------------------------


def imu_fwd_ref(dts, accels, gyros, accel_bias, gyro_bias, init_state,
                poses_q, poses_t, sync, gravity):
    f32 = jnp.float32
    accels = jnp.asarray(accels, f32)
    gyros = jnp.asarray(gyros, f32)
    dts = jnp.asarray(dts, f32).reshape(-1)
    n = accels.shape[0]
    if dts.shape[0] < n:
        dts = jnp.concatenate([dts, jnp.zeros((n - dts.shape[0],), f32)])
    dts = dts[:n]
    ab = jnp.asarray(accel_bias, f32)
    gb = jnp.asarray(gyro_bias, f32)
    q0 = jnp.asarray(init_state[0:4], f32)
    p0 = jnp.asarray(init_state[4:7], f32)
    v0 = jnp.asarray(init_state[7:10], f32)

    def step(carry, inp):
        q, p, v = carry
        dt, a, w = inp
        a = a - ab
        w = w - gb
        rax, ray, raz = _quat_rotate(q[0], q[1], q[2], q[3], a[0], a[1], a[2])
        ra = jnp.stack([rax, ray, raz - gravity])
        p_new = p + v * dt + 0.5 * ra * dt * dt
        v_new = v + ra * dt
        dqx, dqy, dqz, dqw = _so3_exp(w[0] * dt, w[1] * dt, w[2] * dt)
        nx, ny, nz, nw = _quat_mul(q[0], q[1], q[2], q[3], dqx, dqy, dqz, dqw)
        q_new = jnp.stack([nx, ny, nz, nw])
        q_new = q_new / jnp.linalg.norm(q_new)
        return (q_new, p_new, v_new), (q_new, p_new)

    _, (qs, ps) = lax.scan(step, (q0, p0, v0), (dts, accels, gyros))
    qsync = qs[sync]
    psync = ps[sync]
    pq = jnp.asarray(poses_q, f32)
    rx, ry, rz, rw = _quat_mul(-pq[:, 0], -pq[:, 1], -pq[:, 2], pq[:, 3],
                               qsync[:, 0], qsync[:, 1], qsync[:, 2], qsync[:, 3])
    roterr = jnp.sqrt(jnp.sum(_so3_log_sq(rx, ry, rz, rw)))
    transerr = jnp.mean((jnp.asarray(poses_t, f32) - psync) ** 2)
    return roterr + transerr


# --------------------------------------- demo ----------------------------------------------------

if __name__ == "__main__":
    key = jax.random.PRNGKey(0)
    N, M = 16, 4
    gravity = 9.81007

    k1, k2, k3, k4, k5, k6 = jax.random.split(key, 6)

    dts = jnp.full((N, 1), 0.01, dtype=jnp.float32)
    # near-stationary IMU: accelerometer reads ~[0, 0, +g] in body frame, small gyro rates
    accels = (jnp.array([0.0, 0.0, gravity], jnp.float32)[None, :]
              + 0.1 * jax.random.normal(k1, (N, 3), dtype=jnp.float32))
    gyros = 0.05 * jax.random.normal(k2, (N, 3), dtype=jnp.float32)

    # learnable parameters of IMUFwd (deterministic synthetic init)
    accel_bias = 0.01 * jax.random.normal(k3, (3,), dtype=jnp.float32)
    gyro_bias = 0.01 * jax.random.normal(k4, (3,), dtype=jnp.float32)

    # prase_init(init=None): identity rotation, zero pos / vel
    init_state = jnp.concatenate(
        [jnp.array([0.0, 0.0, 0.0, 1.0], jnp.float32), jnp.zeros((6,), jnp.float32)])

    # reference poses: M small rotations near identity (xyzw) + small translations
    pq = 0.05 * jax.random.normal(k5, (M, 4), dtype=jnp.float32) \
        + jnp.array([0.0, 0.0, 0.0, 1.0], jnp.float32)[None, :]
    pq = pq / jnp.linalg.norm(pq, axis=-1, keepdims=True)
    pt = 0.01 * jax.random.normal(k6, (M, 3), dtype=jnp.float32)
    sync = jnp.array([3, 7, 11, 15], dtype=jnp.int32)

    loss = imu_fwd(dts, accels, gyros, accel_bias, gyro_bias, init_state,
                   pq, pt, sync, gravity)
    jax.block_until_ready(loss)

    loss_ref = imu_fwd_ref(dts, accels, gyros, accel_bias, gyro_bias, init_state,
                           pq, pt, sync, gravity)
    jax.block_until_ready(loss_ref)

    assert jnp.isfinite(loss)
    assert jnp.allclose(loss, loss_ref, rtol=1e-3, atol=1e-3), (loss, loss_ref)
    print("KERNEL_OK")
</pallas_src>

<mosaic_0001>
module attributes {stable_mosaic.version = 11 : i64} {
  func.func @_imu_fwd_kernel(%arg0: memref<8x128xf32, #tpu.memory_space<vmem>>, %arg1: memref<1x3xf32, #tpu.memory_space<vmem>>, %arg2: memref<1x3xf32, #tpu.memory_space<vmem>>, %arg3: memref<1x10xf32, #tpu.memory_space<vmem>>, %arg4: memref<4x4xf32, #tpu.memory_space<vmem>>, %arg5: memref<4x3xf32, #tpu.memory_space<vmem>>, %arg6: memref<4x1xi32, #tpu.memory_space<vmem>>, %arg7: memref<1x1xf32, #tpu.memory_space<vmem>>) attributes {dimension_semantics = [], scalar_prefetch = 0 : i64, scratch_operands = 0 : i64, tpu.core_type = #tpu.core_type<tc>} {
    %c0 = arith.constant 0 : index
    %c0_0 = arith.constant 0 : index
    %0 = vector.load %arg0[%c0, %c0_0] : memref<8x128xf32, #tpu.memory_space<vmem>>, vector<8x128xf32>
    %1 = vector.extract_strided_slice %0 {offsets = [0, 0], sizes = [1, 128], strides = [1, 1]} : vector<8x128xf32> to vector<1x128xf32>
    %2 = vector.extract_strided_slice %0 {offsets = [1, 0], sizes = [1, 128], strides = [1, 1]} : vector<8x128xf32> to vector<1x128xf32>
    %3 = vector.extract_strided_slice %0 {offsets = [2, 0], sizes = [1, 128], strides = [1, 1]} : vector<8x128xf32> to vector<1x128xf32>
    %4 = vector.extract_strided_slice %0 {offsets = [3, 0], sizes = [1, 128], strides = [1, 1]} : vector<8x128xf32> to vector<1x128xf32>
    %5 = vector.extract_strided_slice %0 {offsets = [4, 0], sizes = [1, 128], strides = [1, 1]} : vector<8x128xf32> to vector<1x128xf32>
    %6 = vector.extract_strided_slice %0 {offsets = [5, 0], sizes = [1, 128], strides = [1, 1]} : vector<8x128xf32> to vector<1x128xf32>
    %7 = vector.extract_strided_slice %0 {offsets = [6, 0], sizes = [1, 128], strides = [1, 1]} : vector<8x128xf32> to vector<1x128xf32>
    %8 = vector.extract_strided_slice %0 {offsets = [7, 0], sizes = [1, 128], strides = [1, 1]} : vector<8x128xf32> to vector<1x128xf32>
    %c0_1 = arith.constant 0 : index
    %c0_2 = arith.constant 0 : index
    %9 = vector.load %arg1[%c0_1, %c0_2] : memref<1x3xf32, #tpu.memory_space<vmem>>, vector<1x3xf32>
    %c0_3 = arith.constant 0 : index
    %c0_4 = arith.constant 0 : index
    %10 = vector.load %arg2[%c0_3, %c0_4] : memref<1x3xf32, #tpu.memory_space<vmem>>, vector<1x3xf32>
    %c0_5 = arith.constant 0 : index
    %c0_6 = arith.constant 0 : index
    %11 = vector.load %arg3[%c0_5, %c0_6] : memref<1x10xf32, #tpu.memory_space<vmem>>, vector<1x10xf32>
    %12 = vector.extract_strided_slice %11 {offsets = [0, 0], sizes = [1, 1], strides = [1, 1]} : vector<1x10xf32> to vector<1x1xf32>
    %13 = vector.extract_strided_slice %11 {offsets = [0, 1], sizes = [1, 1], strides = [1, 1]} : vector<1x10xf32> to vector<1x1xf32>
    %14 = vector.extract_strided_slice %11 {offsets = [0, 2], sizes = [1, 1], strides = [1, 1]} : vector<1x10xf32> to vector<1x1xf32>
    %15 = vector.extract_strided_slice %11 {offsets = [0, 3], sizes = [1, 1], strides = [1, 1]} : vector<1x10xf32> to vector<1x1xf32>
    %16 = vector.extract_strided_slice %11 {offsets = [0, 4], sizes = [1, 1], strides = [1, 1]} : vector<1x10xf32> to vector<1x1xf32>
    %17 = vector.extract_strided_slice %11 {offsets = [0, 5], sizes = [1, 1], strides = [1, 1]} : vector<1x10xf32> to vector<1x1xf32>
    %18 = vector.extract_strided_slice %11 {offsets = [0, 6], sizes = [1, 1], strides = [1, 1]} : vector<1x10xf32> to vector<1x1xf32>
    %19 = vector.extract_strided_slice %11 {offsets = [0, 7], sizes = [1, 1], strides = [1, 1]} : vector<1x10xf32> to vector<1x1xf32>
    %20 = vector.extract_strided_slice %11 {offsets = [0, 8], sizes = [1, 1], strides = [1, 1]} : vector<1x10xf32> to vector<1x1xf32>
    %21 = vector.extract_strided_slice %11 {offsets = [0, 9], sizes = [1, 1], strides = [1, 1]} : vector<1x10xf32> to vector<1x1xf32>
    %22 = vector.extract_strided_slice %10 {offsets = [0, 0], sizes = [1, 1], strides = [1, 1]} : vector<1x3xf32> to vector<1x1xf32>
    %23 = vector.broadcast %22 : vector<1x1xf32> to vector<1x128xf32>
    %24 = arith.subf %5, %23 : vector<1x128xf32>
    %25 = arith.mulf %24, %1 : vector<1x128xf32>
    %26 = vector.extract_strided_slice %10 {offsets = [0, 1], sizes = [1, 1], strides = [1, 1]} : vector<1x3xf32> to vector<1x1xf32>
    %27 = vector.broadcast %26 : vector<1x1xf32> to vector<1x128xf32>
    %28 = arith.subf %6, %27 : vector<1x128xf32>
    %29 = arith.mulf %28, %1 : vector<1x128xf32>
    %30 = vector.extract_strided_slice %10 {offsets = [0, 2], sizes = [1, 1], strides = [1, 1]} : vector<1x3xf32> to vector<1x1xf32>
    %31 = vector.broadcast %30 : vector<1x1xf32> to vector<1x128xf32>
    %32 = arith.subf %7, %31 : vector<1x128xf32>
    %33 = arith.mulf %32, %1 : vector<1x128xf32>
    %34 = arith.mulf %25, %25 : vector<1x128xf32>
    %35 = arith.mulf %29, %29 : vector<1x128xf32>
    %36 = arith.addf %34, %35 : vector<1x128xf32>
    %37 = arith.mulf %33, %33 : vector<1x128xf32>
    %38 = arith.addf %36, %37 : vector<1x128xf32>
    %39 = math.sqrt %38 : vector<1x128xf32>
    %cst = arith.constant 5.000000e-01 : f32
    %40 = vector.broadcast %cst : f32 to vector<1x128xf32>
    %41 = arith.mulf %40, %39 : vector<1x128xf32>
    %cst_7 = arith.constant 9.99999974E-5 : f32
    %42 = vector.broadcast %cst_7 : f32 to vector<1x128xf32>
    %43 = arith.cmpf olt, %39, %42 : vector<1x128xf32>
    %cst_8 = arith.constant 9.99999993E-9 : f32
    %44 = vector.broadcast %cst_8 : f32 to vector<1x128xf32>
    %45 = arith.maximumf %39, %44 : vector<1x128xf32>
    %46 = tpu.reciprocal %45 {approx = true} : vector<1x128xf32> -> vector<1x128xf32>
    %cst_9 = arith.constant 4.800000e+01 : f32
    %47 = vector.broadcast %cst_9 : f32 to vector<1x128xf32>
    %48 = arith.divf %38, %47 : vector<1x128xf32>
    %cst_10 = arith.constant 5.000000e-01 : f32
    %49 = vector.broadcast %cst_10 : f32 to vector<1x128xf32>
    %50 = arith.subf %49, %48 : vector<1x128xf32>
    %51 = math.sin %41 : vector<1x128xf32>
    %52 = arith.mulf %51, %46 : vector<1x128xf32>
    %53 = arith.select %43, %50, %52 : vector<1x128xi1>, vector<1x128xf32>
    %54 = math.cos %41 : vector<1x128xf32>
    %55 = arith.mulf %53, %25 : vector<1x128xf32>
    %56 = arith.mulf %53, %29 : vector<1x128xf32>
    %57 = arith.mulf %53, %33 : vector<1x128xf32>
    %58 = tpu.iota {dimensions = array<i32: 1>} : vector<1x128xi32>
    %c1_i32 = arith.constant 1 : i32
    %59 = vector.broadcast %c1_i32 : i32 to vector<1x128xi32>
    %60 = arith.cmpi sge, %58, %59 : vector<1x128xi32>
    %c1_i32_11 = arith.constant 1 : i32
    %61 = tpu.dynamic_rotate %55 by %c1_i32_11 dim 1 : vector<1x128xf32>, i32 -> vector<1x128xf32>
    %cst_12 = arith.constant 0.000000e+00 : f32
    %62 = vector.broadcast %cst_12 : f32 to vector<1x128xf32>
    %63 = arith.select %60, %61, %62 : vector<1x128xi1>, vector<1x128xf32>
    %c1_i32_13 = arith.constant 1 : i32
    %64 = tpu.dynamic_rotate %56 by %c1_i32_13 dim 1 : vector<1x128xf32>, i32 -> vector<1x128xf32>
    %cst_14 = arith.constant 0.000000e+00 : f32
    %65 = vector.broadcast %cst_14 : f32 to vector<1x128xf32>
    %66 = arith.select %60, %64, %65 : vector<1x128xi1>, vector<1x128xf32>
    %c1_i32_15 = arith.constant 1 : i32
    %67 = tpu.dynamic_rotate %57 by %c1_i32_15 dim 1 : vector<1x128xf32>, i32 -> vector<1x128xf32>
    %cst_16 = arith.constant 0.000000e+00 : f32
    %68 = vector.broadcast %cst_16 : f32 to vector<1x128xf32>
    %69 = arith.select %60, %67, %68 : vector<1x128xi1>, vector<1x128xf32>
    %c1_i32_17 = arith.constant 1 : i32
    %70 = tpu.dynamic_rotate %54 by %c1_i32_17 dim 1 : vector<1x128xf32>, i32 -> vector<1x128xf32>
    %cst_18 = arith.constant 1.000000e+00 : f32
    %71 = vector.broadcast %cst_18 : f32 to vector<1x128xf32>
    %72 = arith.select %60, %70, %71 : vector<1x128xi1>, vector<1x128xf32>
    %c1_i32_19 = arith.constant 1 : i32
    %73 = vector.broadcast %c1_i32_19 : i32 to vector<1x128xi32>
    %74 = arith.cmpi sge, %58, %73 : vector<1x128xi32>
    %c1_i32_20 = arith.constant 1 : i32
    %75 = tpu.dynamic_rotate %63 by %c1_i32_20 dim 1 : vector<1x128xf32>, i32 -> vector<1x128xf32>
    %cst_21 = arith.constant 0.000000e+00 : f32
    %76 = vector.broadcast %cst_21 : f32 to vector<1x128xf32>
    %77 = arith.select %74, %75, %76 : vector<1x128xi1>, vector<1x128xf32>
    %c1_i32_22 = arith.constant 1 : i32
    %78 = tpu.dynamic_rotate %66 by %c1_i32_22 dim 1 : vector<1x128xf32>, i32 -> vector<1x128xf32>
    %cst_23 = arith.constant 0.000000e+00 : f32
    %79 = vector.broadcast %cst_23 : f32 to vector<1x128xf32>
    %80 = arith.select %74, %78, %79 : vector<1x128xi1>, vector<1x128xf32>
    %c1_i32_24 = arith.constant 1 : i32
    %81 = tpu.dynamic_rotate %69 by %c1_i32_24 dim 1 : vector<1x128xf32>, i32 -> vector<1x128xf32>
    %cst_25 = arith.constant 0.000000e+00 : f32
    %82 = vector.broadcast %cst_25 : f32 to vector<1x128xf32>
    %83 = arith.select %74, %81, %82 : vector<1x128xi1>, vector<1x128xf32>
    %c1_i32_26 = arith.constant 1 : i32
    %84 = tpu.dynamic_rotate %72 by %c1_i32_26 dim 1 : vector<1x128xf32>, i32 -> vector<1x128xf32>
    %cst_27 = arith.constant 1.000000e+00 : f32
    %85 = vector.broadcast %cst_27 : f32 to vector<1x128xf32>
    %86 = arith.select %74, %84, %85 : vector<1x128xi1>, vector<1x128xf32>
    %87 = arith.mulf %86, %63 : vector<1x128xf32>
    %88 = arith.mulf %77, %72 : vector<1x128xf32>
    %89 = arith.addf %87, %88 : vector<1x128xf32>
    %90 = arith.mulf %80, %69 : vector<1x128xf32>
    %91 = arith.addf %89, %90 : vector<1x128xf32>
    %92 = arith.mulf %83, %66 : vector<1x128xf32>
    %93 = arith.subf %91, %92 : vector<1x128xf32>
    %94 = arith.mulf %86, %66 : vector<1x128xf32>
    %95 = arith.mulf %77, %69 : vector<1x128xf32>
    %96 = arith.subf %94, %95 : vector<1x128xf32>
    %97 = arith.mulf %80, %72 : vector<1x128xf32>
    %98 = arith.addf %96, %97 : vector<1x128xf32>
    %99 = arith.mulf %83, %63 : vector<1x128xf32>
    %100 = arith.addf %98, %99 : vector<1x128xf32>
    %101 = arith.mulf %86, %69 : vector<1x128xf32>
    %102 = arith.mulf %77, %66 : vector<1x128xf32>
    %103 = arith.addf %101, %102 : vector<1x128xf32>
    %104 = arith.mulf %80, %63 : vector<1x128xf32>
    %105 = arith.subf %103, %104 : vector<1x128xf32>
    %106 = arith.mulf %83, %72 : vector<1x128xf32>
    %107 = arith.addf %105, %106 : vector<1x128xf32>
    %108 = arith.mulf %86, %72 : vector<1x128xf32>
    %109 = arith.mulf %77, %63 : vector<1x128xf32>
    %110 = arith.subf %108, %109 : vector<1x128xf32>
    %111 = arith.mulf %80, %66 : vector<1x128xf32>
    %112 = arith.subf %110, %111 : vector<1x128xf32>
    %113 = arith.mulf %83, %69 : vector<1x128xf32>
    %114 = arith.subf %112, %113 : vector<1x128xf32>
    %c2_i32 = arith.constant 2 : i32
    %115 = vector.broadcast %c2_i32 : i32 to vector<1x128xi32>
    %116 = arith.cmpi sge, %58, %115 : vector<1x128xi32>
    %c2_i32_28 = arith.constant 2 : i32
    %117 = tpu.dynamic_rotate %93 by %c2_i32_28 dim 1 : vector<1x128xf32>, i32 -> vector<1x128xf32>
    %cst_29 = arith.constant 0.000000e+00 : f32
    %118 = vector.broadcast %cst_29 : f32 to vector<1x128xf32>
    %119 = arith.select %116, %117, %118 : vector<1x128xi1>, vector<1x128xf32>
    %c2_i32_30 = arith.constant 2 : i32
    %120 = tpu.dynamic_rotate %100 by %c2_i32_30 dim 1 : vector<1x128xf32>, i32 -> vector<1x128xf32>
    %cst_31 = arith.constant 0.000000e+00 : f32
    %121 = vector.broadcast %cst_31 : f32 to vector<1x128xf32>
    %122 = arith.select %116, %120, %121 : vector<1x128xi1>, vector<1x128xf32>
    %c2_i32_32 = arith.constant 2 : i32
    %123 = tpu.dynamic_rotate %107 by %c2_i32_32 dim 1 : vector<1x128xf32>, i32 -> vector<1x128xf32>
    %cst_33 = arith.constant 0.000000e+00 : f32
    %124 = vector.broadcast %cst_33 : f32 to vector<1x128xf32>
    %125 = arith.select %116, %123, %124 : vector<1x128xi1>, vector<1x128xf32>
    %c2_i32_34 = arith.constant 2 : i32
    %126 = tpu.dynamic_rotate %114 by %c2_i32_34 dim 1 : vector<1x128xf32>, i32 -> vector<1x128xf32>
    %cst_35 = arith.constant 1.000000e+00 : f32
    %127 = vector.broadcast %cst_35 : f32 to vector<1x128xf32>
    %128 = arith.select %116, %126, %127 : vector<1x128xi1>, vector<1x128xf32>
    %129 = arith.mulf %128, %93 : vector<1x128xf32>
    %130 = arith.mulf %119, %114 : vector<1x128xf32>
    %131 = arith.addf %129, %130 : vector<1x128xf32>
    %132 = arith.mulf %122, %107 : vector<1x128xf32>
    %133 = arith.addf %131, %132 : vector<1x128xf32>
    %134 = arith.mulf %125, %100 : vector<1x128xf32>
    %135 = arith.subf %133, %134 : vector<1x128xf32>
    %136 = arith.mulf %128, %100 : vector<1x128xf32>
    %137 = arith.mulf %119, %107 : vector<1x128xf32>
    %138 = arith.subf %136, %137 : vector<1x128xf32>
    %139 = arith.mulf %122, %114 : vector<1x128xf32>
    %140 = arith.addf %138, %139 : vector<1x128xf32>
    %141 = arith.mulf %125, %93 : vector<1x128xf32>
    %142 = arith.addf %140, %141 : vector<1x128xf32>
    %143 = arith.mulf %128, %107 : vector<1x128xf32>
    %144 = arith.mulf %119, %100 : vector<1x128xf32>
    %145 = arith.addf %143, %144 : vector<1x128xf32>
    %146 = arith.mulf %122, %93 : vector<1x128xf32>
    %147 = arith.subf %145, %146 : vector<1x128xf32>
    %148 = arith.mulf %125, %114 : vector<1x128xf32>
    %149 = arith.addf %147, %148 : vector<1x128xf32>
    %150 = arith.mulf %128, %114 : vector<1x128xf32>
    %151 = arith.mulf %119, %93 : vector<1x128xf32>
    %152 = arith.subf %150, %151 : vector<1x128xf32>
    %153 = arith.mulf %122, %100 : vector<1x128xf32>
    %154 = arith.subf %152, %153 : vector<1x128xf32>
    %155 = arith.mulf %125, %107 : vector<1x128xf32>
    %156 = arith.subf %154, %155 : vector<1x128xf32>
    %c4_i32 = arith.constant 4 : i32
    %157 = vector.broadcast %c4_i32 : i32 to vector<1x128xi32>
    %158 = arith.cmpi sge, %58, %157 : vector<1x128xi32>
    %c4_i32_36 = arith.constant 4 : i32
    %159 = tpu.dynamic_rotate %135 by %c4_i32_36 dim 1 : vector<1x128xf32>, i32 -> vector<1x128xf32>
    %cst_37 = arith.constant 0.000000e+00 : f32
    %160 = vector.broadcast %cst_37 : f32 to vector<1x128xf32>
    %161 = arith.select %158, %159, %160 : vector<1x128xi1>, vector<1x128xf32>
    %c4_i32_38 = arith.constant 4 : i32
    %162 = tpu.dynamic_rotate %142 by %c4_i32_38 dim 1 : vector<1x128xf32>, i32 -> vector<1x128xf32>
    %cst_39 = arith.constant 0.000000e+00 : f32
    %163 = vector.broadcast %cst_39 : f32 to vector<1x128xf32>
    %164 = arith.select %158, %162, %163 : vector<1x128xi1>, vector<1x128xf32>
    %c4_i32_40 = arith.constant 4 : i32
    %165 = tpu.dynamic_rotate %149 by %c4_i32_40 dim 1 : vector<1x128xf32>, i32 -> vector<1x128xf32>
    %cst_41 = arith.constant 0.000000e+00 : f32
    %166 = vector.broadcast %cst_41 : f32 to vector<1x128xf32>
    %167 = arith.select %158, %165, %166 : vector<1x128xi1>, vector<1x128xf32>
    %c4_i32_42 = arith.constant 4 : i32
    %168 = tpu.dynamic_rotate %156 by %c4_i32_42 dim 1 : vector<1x128xf32>, i32 -> vector<1x128xf32>
    %cst_43 = arith.constant 1.000000e+00 : f32
    %169 = vector.broadcast %cst_43 : f32 to vector<1x128xf32>
    %170 = arith.select %158, %168, %169 : vector<1x128xi1>, vector<1x128xf32>
    %171 = arith.mulf %170, %135 : vector<1x128xf32>
    %172 = arith.mulf %161, %156 : vector<1x128xf32>
    %173 = arith.addf %171, %172 : vector<1x128xf32>
    %174 = arith.mulf %164, %149 : vector<1x128xf32>
    %175 = arith.addf %173, %174 : vector<1x128xf32>
    %176 = arith.mulf %167, %142 : vector<1x128xf32>
    %177 = arith.subf %175, %176 : vector<1x128xf32>
    %178 = arith.mulf %170, %142 : vector<1x128xf32>
    %179 = arith.mulf %161, %149 : vector<1x128xf32>
    %180 = arith.subf %178, %179 : vector<1x128xf32>
    %181 = arith.mulf %164, %156 : vector<1x128xf32>
    %182 = arith.addf %180, %181 : vector<1x128xf32>
    %183 = arith.mulf %167, %135 : vector<1x128xf32>
    %184 = arith.addf %182, %183 : vector<1x128xf32>
    %185 = arith.mulf %170, %149 : vector<1x128xf32>
    %186 = arith.mulf %161, %142 : vector<1x128xf32>
    %187 = arith.addf %185, %186 : vector<1x128xf32>
    %188 = arith.mulf %164, %135 : vector<1x128xf32>
    %189 = arith.subf %187, %188 : vector<1x128xf32>
    %190 = arith.mulf %167, %156 : vector<1x128xf32>
    %191 = arith.addf %189, %190 : vector<1x128xf32>
    %192 = arith.mulf %170, %156 : vector<1x128xf32>
    %193 = arith.mulf %161, %135 : vector<1x128xf32>
    %194 = arith.subf %192, %193 : vector<1x128xf32>
    %195 = arith.mulf %164, %142 : vector<1x128xf32>
    %196 = arith.subf %194, %195 : vector<1x128xf32>
    %197 = arith.mulf %167, %149 : vector<1x128xf32>
    %198 = arith.subf %196, %197 : vector<1x128xf32>
    %c8_i32 = arith.constant 8 : i32
    %199 = vector.broadcast %c8_i32 : i32 to vector<1x128xi32>
    %200 = arith.cmpi sge, %58, %199 : vector<1x128xi32>
    %c8_i32_44 = arith.constant 8 : i32
    %201 = tpu.dynamic_rotate %177 by %c8_i32_44 dim 1 : vector<1x128xf32>, i32 -> vector<1x128xf32>
    %cst_45 = arith.constant 0.000000e+00 : f32
    %202 = vector.broadcast %cst_45 : f32 to vector<1x128xf32>
    %203 = arith.select %200, %201, %202 : vector<1x128xi1>, vector<1x128xf32>
    %c8_i32_46 = arith.constant 8 : i32
    %204 = tpu.dynamic_rotate %184 by %c8_i32_46 dim 1 : vector<1x128xf32>, i32 -> vector<1x128xf32>
    %cst_47 = arith.constant 0.000000e+00 : f32
    %205 = vector.broadcast %cst_47 : f32 to vector<1x128xf32>
    %206 = arith.select %200, %204, %205 : vector<1x128xi1>, vector<1x128xf32>
    %c8_i32_48 = arith.constant 8 : i32
    %207 = tpu.dynamic_rotate %191 by %c8_i32_48 dim 1 : vector<1x128xf32>, i32 -> vector<1x128xf32>
    %cst_49 = arith.constant 0.000000e+00 : f32
    %208 = vector.broadcast %cst_49 : f32 to vector<1x128xf32>
    %209 = arith.select %200, %207, %208 : vector<1x128xi1>, vector<1x128xf32>
    %c8_i32_50 = arith.constant 8 : i32
    %210 = tpu.dynamic_rotate %198 by %c8_i32_50 dim 1 : vector<1x128xf32>, i32 -> vector<1x128xf32>
    %cst_51 = arith.constant 1.000000e+00 : f32
    %211 = vector.broadcast %cst_51 : f32 to vector<1x128xf32>
    %212 = arith.select %200, %210, %211 : vector<1x128xi1>, vector<1x128xf32>
    %213 = arith.mulf %212, %177 : vector<1x128xf32>
    %214 = arith.mulf %203, %198 : vector<1x128xf32>
    %215 = arith.addf %213, %214 : vector<1x128xf32>
    %216 = arith.mulf %206, %191 : vector<1x128xf32>
    %217 = arith.addf %215, %216 : vector<1x128xf32>
    %218 = arith.mulf %209, %184 : vector<1x128xf32>
    %219 = arith.subf %217, %218 : vector<1x128xf32>
    %220 = arith.mulf %212, %184 : vector<1x128xf32>
    %221 = arith.mulf %203, %191 : vector<1x128xf32>
    %222 = arith.subf %220, %221 : vector<1x128xf32>
    %223 = arith.mulf %206, %198 : vector<1x128xf32>
    %224 = arith.addf %222, %223 : vector<1x128xf32>
    %225 = arith.mulf %209, %177 : vector<1x128xf32>
    %226 = arith.addf %224, %225 : vector<1x128xf32>
    %227 = arith.mulf %212, %191 : vector<1x128xf32>
    %228 = arith.mulf %203, %184 : vector<1x128xf32>
    %229 = arith.addf %227, %228 : vector<1x128xf32>
    %230 = arith.mulf %206, %177 : vector<1x128xf32>
    %231 = arith.subf %229, %230 : vector<1x128xf32>
    %232 = arith.mulf %209, %198 : vector<1x128xf32>
    %233 = arith.addf %231, %232 : vector<1x128xf32>
    %234 = arith.mulf %212, %198 : vector<1x128xf32>
    %235 = arith.mulf %203, %177 : vector<1x128xf32>
    %236 = arith.subf %234, %235 : vector<1x128xf32>
    %237 = arith.mulf %206, %184 : vector<1x128xf32>
    %238 = arith.subf %236, %237 : vector<1x128xf32>
    %239 = arith.mulf %209, %191 : vector<1x128xf32>
    %240 = arith.subf %238, %239 : vector<1x128xf32>
    %c16_i32 = arith.constant 16 : i32
    %241 = vector.broadcast %c16_i32 : i32 to vector<1x128xi32>
    %242 = arith.cmpi sge, %58, %241 : vector<1x128xi32>
    %c16_i32_52 = arith.constant 16 : i32
    %243 = tpu.dynamic_rotate %219 by %c16_i32_52 dim 1 : vector<1x128xf32>, i32 -> vector<1x128xf32>
    %cst_53 = arith.constant 0.000000e+00 : f32
    %244 = vector.broadcast %cst_53 : f32 to vector<1x128xf32>
    %245 = arith.select %242, %243, %244 : vector<1x128xi1>, vector<1x128xf32>
    %c16_i32_54 = arith.constant 16 : i32
    %246 = tpu.dynamic_rotate %226 by %c16_i32_54 dim 1 : vector<1x128xf32>, i32 -> vector<1x128xf32>
    %cst_55 = arith.constant 0.000000e+00 : f32
    %247 = vector.broadcast %cst_55 : f32 to vector<1x128xf32>
    %248 = arith.select %242, %246, %247 : vector<1x128xi1>, vector<1x128xf32>
    %c16_i32_56 = arith.constant 16 : i32
    %249 = tpu.dynamic_rotate %233 by %c16_i32_56 dim 1 : vector<1x128xf32>, i32 -> vector<1x128xf32>
    %cst_57 = arith.constant 0.000000e+00 : f32
    %250 = vector.broadcast %cst_57 : f32 to vector<1x128xf32>
    %251 = arith.select %242, %249, %250 : vector<1x128xi1>, vector<1x128xf32>
    %c16_i32_58 = arith.constant 16 : i32
    %252 = tpu.dynamic_rotate %240 by %c16_i32_58 dim 1 : vector<1x128xf32>, i32 -> vector<1x128xf32>
    %cst_59 = arith.constant 1.000000e+00 : f32
    %253 = vector.broadcast %cst_59 : f32 to vector<1x128xf32>
    %254 = arith.select %242, %252, %253 : vector<1x128xi1>, vector<1x128xf32>
    %255 = arith.mulf %254, %219 : vector<1x128xf32>
    %256 = arith.mulf %245, %240 : vector<1x128xf32>
    %257 = arith.addf %255, %256 : vector<1x128xf32>
    %258 = arith.mulf %248, %233 : vector<1x128xf32>
    %259 = arith.addf %257, %258 : vector<1x128xf32>
    %260 = arith.mulf %251, %226 : vector<1x128xf32>
    %261 = arith.subf %259, %260 : vector<1x128xf32>
    %262 = arith.mulf %254, %226 : vector<1x128xf32>
    %263 = arith.mulf %245, %233 : vector<1x128xf32>
    %264 = arith.subf %262, %263 : vector<1x128xf32>
    %265 = arith.mulf %248, %240 : vector<1x128xf32>
    %266 = arith.addf %264, %265 : vector<1x128xf32>
    %267 = arith.mulf %251, %219 : vector<1x128xf32>
    %268 = arith.addf %266, %267 : vector<1x128xf32>
    %269 = arith.mulf %254, %233 : vector<1x128xf32>
    %270 = arith.mulf %245, %226 : vector<1x128xf32>
    %271 = arith.addf %269, %270 : vector<1x128xf32>
    %272 = arith.mulf %248, %219 : vector<1x128xf32>
    %273 = arith.subf %271, %272 : vector<1x128xf32>
    %274 = arith.mulf %251, %240 : vector<1x128xf32>
    %275 = arith.addf %273, %274 : vector<1x128xf32>
    %276 = arith.mulf %254, %240 : vector<1x128xf32>
    %277 = arith.mulf %245, %219 : vector<1x128xf32>
    %278 = arith.subf %276, %277 : vector<1x128xf32>
    %279 = arith.mulf %248, %226 : vector<1x128xf32>
    %280 = arith.subf %278, %279 : vector<1x128xf32>
    %281 = arith.mulf %251, %233 : vector<1x128xf32>
    %282 = arith.subf %280, %281 : vector<1x128xf32>
    %c32_i32 = arith.constant 32 : i32
    %283 = vector.broadcast %c32_i32 : i32 to vector<1x128xi32>
    %284 = arith.cmpi sge, %58, %283 : vector<1x128xi32>
    %c32_i32_60 = arith.constant 32 : i32
    %285 = tpu.dynamic_rotate %261 by %c32_i32_60 dim 1 : vector<1x128xf32>, i32 -> vector<1x128xf32>
    %cst_61 = arith.constant 0.000000e+00 : f32
    %286 = vector.broadcast %cst_61 : f32 to vector<1x128xf32>
    %287 = arith.select %284, %285, %286 : vector<1x128xi1>, vector<1x128xf32>
    %c32_i32_62 = arith.constant 32 : i32
    %288 = tpu.dynamic_rotate %268 by %c32_i32_62 dim 1 : vector<1x128xf32>, i32 -> vector<1x128xf32>
    %cst_63 = arith.constant 0.000000e+00 : f32
    %289 = vector.broadcast %cst_63 : f32 to vector<1x128xf32>
    %290 = arith.select %284, %288, %289 : vector<1x128xi1>, vector<1x128xf32>
    %c32_i32_64 = arith.constant 32 : i32
    %291 = tpu.dynamic_rotate %275 by %c32_i32_64 dim 1 : vector<1x128xf32>, i32 -> vector<1x128xf32>
    %cst_65 = arith.constant 0.000000e+00 : f32
    %292 = vector.broadcast %cst_65 : f32 to vector<1x128xf32>
    %293 = arith.select %284, %291, %292 : vector<1x128xi1>, vector<1x128xf32>
    %c32_i32_66 = arith.constant 32 : i32
    %294 = tpu.dynamic_rotate %282 by %c32_i32_66 dim 1 : vector<1x128xf32>, i32 -> vector<1x128xf32>
    %cst_67 = arith.constant 1.000000e+00 : f32
    %295 = vector.broadcast %cst_67 : f32 to vector<1x128xf32>
    %296 = arith.select %284, %294, %295 : vector<1x128xi1>, vector<1x128xf32>
    %297 = arith.mulf %296, %261 : vector<1x128xf32>
    %298 = arith.mulf %287, %282 : vector<1x128xf32>
    %299 = arith.addf %297, %298 : vector<1x128xf32>
    %300 = arith.mulf %290, %275 : vector<1x128xf32>
    %301 = arith.addf %299, %300 : vector<1x128xf32>
    %302 = arith.mulf %293, %268 : vector<1x128xf32>
    %303 = arith.subf %301, %302 : vector<1x128xf32>
    %304 = arith.mulf %296, %268 : vector<1x128xf32>
    %305 = arith.mulf %287, %275 : vector<1x128xf32>
    %306 = arith.subf %304, %305 : vector<1x128xf32>
    %307 = arith.mulf %290, %282 : vector<1x128xf32>
    %308 = arith.addf %306, %307 : vector<1x128xf32>
    %309 = arith.mulf %293, %261 : vector<1x128xf32>
    %310 = arith.addf %308, %309 : vector<1x128xf32>
    %311 = arith.mulf %296, %275 : vector<1x128xf32>
    %312 = arith.mulf %287, %268 : vector<1x128xf32>
    %313 = arith.addf %311, %312 : vector<1x128xf32>
    %314 = arith.mulf %290, %261 : vector<1x128xf32>
    %315 = arith.subf %313, %314 : vector<1x128xf32>
    %316 = arith.mulf %293, %282 : vector<1x128xf32>
    %317 = arith.addf %315, %316 : vector<1x128xf32>
    %318 = arith.mulf %296, %282 : vector<1x128xf32>
    %319 = arith.mulf %287, %261 : vector<1x128xf32>
    %320 = arith.subf %318, %319 : vector<1x128xf32>
    %321 = arith.mulf %290, %268 : vector<1x128xf32>
    %322 = arith.subf %320, %321 : vector<1x128xf32>
    %323 = arith.mulf %293, %275 : vector<1x128xf32>
    %324 = arith.subf %322, %323 : vector<1x128xf32>
    %c64_i32 = arith.constant 64 : i32
    %325 = vector.broadcast %c64_i32 : i32 to vector<1x128xi32>
    %326 = arith.cmpi sge, %58, %325 : vector<1x128xi32>
    %c64_i32_68 = arith.constant 64 : i32
    %327 = tpu.dynamic_rotate %303 by %c64_i32_68 dim 1 : vector<1x128xf32>, i32 -> vector<1x128xf32>
    %cst_69 = arith.constant 0.000000e+00 : f32
    %328 = vector.broadcast %cst_69 : f32 to vector<1x128xf32>
    %329 = arith.select %326, %327, %328 : vector<1x128xi1>, vector<1x128xf32>
    %c64_i32_70 = arith.constant 64 : i32
    %330 = tpu.dynamic_rotate %310 by %c64_i32_70 dim 1 : vector<1x128xf32>, i32 -> vector<1x128xf32>
    %cst_71 = arith.constant 0.000000e+00 : f32
    %331 = vector.broadcast %cst_71 : f32 to vector<1x128xf32>
    %332 = arith.select %326, %330, %331 : vector<1x128xi1>, vector<1x128xf32>
    %c64_i32_72 = arith.constant 64 : i32
    %333 = tpu.dynamic_rotate %317 by %c64_i32_72 dim 1 : vector<1x128xf32>, i32 -> vector<1x128xf32>
    %cst_73 = arith.constant 0.000000e+00 : f32
    %334 = vector.broadcast %cst_73 : f32 to vector<1x128xf32>
    %335 = arith.select %326, %333, %334 : vector<1x128xi1>, vector<1x128xf32>
    %c64_i32_74 = arith.constant 64 : i32
    %336 = tpu.dynamic_rotate %324 by %c64_i32_74 dim 1 : vector<1x128xf32>, i32 -> vector<1x128xf32>
    %cst_75 = arith.constant 1.000000e+00 : f32
    %337 = vector.broadcast %cst_75 : f32 to vector<1x128xf32>
    %338 = arith.select %326, %336, %337 : vector<1x128xi1>, vector<1x128xf32>
    %339 = arith.mulf %338, %303 : vector<1x128xf32>
    %340 = arith.mulf %329, %324 : vector<1x128xf32>
    %341 = arith.addf %339, %340 : vector<1x128xf32>
    %342 = arith.mulf %332, %317 : vector<1x128xf32>
    %343 = arith.addf %341, %342 : vector<1x128xf32>
    %344 = arith.mulf %335, %310 : vector<1x128xf32>
    %345 = arith.subf %343, %344 : vector<1x128xf32>
    %346 = arith.mulf %338, %310 : vector<1x128xf32>
    %347 = arith.mulf %329, %317 : vector<1x128xf32>
    %348 = arith.subf %346, %347 : vector<1x128xf32>
    %349 = arith.mulf %332, %324 : vector<1x128xf32>
    %350 = arith.addf %348, %349 : vector<1x128xf32>
    %351 = arith.mulf %335, %303 : vector<1x128xf32>
    %352 = arith.addf %350, %351 : vector<1x128xf32>
    %353 = arith.mulf %338, %317 : vector<1x128xf32>
    %354 = arith.mulf %329, %310 : vector<1x128xf32>
    %355 = arith.addf %353, %354 : vector<1x128xf32>
    %356 = arith.mulf %332, %303 : vector<1x128xf32>
    %357 = arith.subf %355, %356 : vector<1x128xf32>
    %358 = arith.mulf %335, %324 : vector<1x128xf32>
    %359 = arith.addf %357, %358 : vector<1x128xf32>
    %360 = arith.mulf %338, %324 : vector<1x128xf32>
    %361 = arith.mulf %329, %303 : vector<1x128xf32>
    %362 = arith.subf %360, %361 : vector<1x128xf32>
    %363 = arith.mulf %332, %310 : vector<1x128xf32>
    %364 = arith.subf %362, %363 : vector<1x128xf32>
    %365 = arith.mulf %335, %317 : vector<1x128xf32>
    %366 = arith.subf %364, %365 : vector<1x128xf32>
    %367 = vector.broadcast %15 : vector<1x1xf32> to vector<1x128xf32>
    %368 = arith.mulf %367, %345 : vector<1x128xf32>
    %369 = vector.broadcast %12 : vector<1x1xf32> to vector<1x128xf32>
    %370 = arith.mulf %369, %366 : vector<1x128xf32>
    %371 = arith.addf %368, %370 : vector<1x128xf32>
    %372 = vector.broadcast %13 : vector<1x1xf32> to vector<1x128xf32>
    %373 = arith.mulf %372, %359 : vector<1x128xf32>
    %374 = arith.addf %371, %373 : vector<1x128xf32>
    %375 = vector.broadcast %14 : vector<1x1xf32> to vector<1x128xf32>
    %376 = arith.mulf %375, %352 : vector<1x128xf32>
    %377 = arith.subf %374, %376 : vector<1x128xf32>
    %378 = vector.broadcast %15 : vector<1x1xf32> to vector<1x128xf32>
    %379 = arith.mulf %378, %352 : vector<1x128xf32>
    %380 = vector.broadcast %12 : vector<1x1xf32> to vector<1x128xf32>
    %381 = arith.mulf %380, %359 : vector<1x128xf32>
    %382 = arith.subf %379, %381 : vector<1x128xf32>
    %383 = vector.broadcast %13 : vector<1x1xf32> to vector<1x128xf32>
    %384 = arith.mulf %383, %366 : vector<1x128xf32>
    %385 = arith.addf %382, %384 : vector<1x128xf32>
    %386 = vector.broadcast %14 : vector<1x1xf32> to vector<1x128xf32>
    %387 = arith.mulf %386, %345 : vector<1x128xf32>
    %388 = arith.addf %385, %387 : vector<1x128xf32>
    %389 = vector.broadcast %15 : vector<1x1xf32> to vector<1x128xf32>
    %390 = arith.mulf %389, %359 : vector<1x128xf32>
    %391 = vector.broadcast %12 : vector<1x1xf32> to vector<1x128xf32>
    %392 = arith.mulf %391, %352 : vector<1x128xf32>
    %393 = arith.addf %390, %392 : vector<1x128xf32>
    %394 = vector.broadcast %13 : vector<1x1xf32> to vector<1x128xf32>
    %395 = arith.mulf %394, %345 : vector<1x128xf32>
    %396 = arith.subf %393, %395 : vector<1x128xf32>
    %397 = vector.broadcast %14 : vector<1x1xf32> to vector<1x128xf32>
    %398 = arith.mulf %397, %366 : vector<1x128xf32>
    %399 = arith.addf %396, %398 : vector<1x128xf32>
    %400 = vector.broadcast %15 : vector<1x1xf32> to vector<1x128xf32>
    %401 = arith.mulf %400, %366 : vector<1x128xf32>
    %402 = vector.broadcast %12 : vector<1x1xf32> to vector<1x128xf32>
    %403 = arith.mulf %402, %345 : vector<1x128xf32>
    %404 = arith.subf %401, %403 : vector<1x128xf32>
    %405 = vector.broadcast %13 : vector<1x1xf32> to vector<1x128xf32>
    %406 = arith.mulf %405, %352 : vector<1x128xf32>
    %407 = arith.subf %404, %406 : vector<1x128xf32>
    %408 = vector.broadcast %14 : vector<1x1xf32> to vector<1x128xf32>
    %409 = arith.mulf %408, %359 : vector<1x128xf32>
    %410 = arith.subf %407, %409 : vector<1x128xf32>
    %411 = arith.mulf %377, %377 : vector<1x128xf32>
    %412 = arith.mulf %388, %388 : vector<1x128xf32>
    %413 = arith.addf %411, %412 : vector<1x128xf32>
    %414 = arith.mulf %399, %399 : vector<1x128xf32>
    %415 = arith.addf %413, %414 : vector<1x128xf32>
    %416 = arith.mulf %410, %410 : vector<1x128xf32>
    %417 = arith.addf %415, %416 : vector<1x128xf32>
    %418 = math.rsqrt %417 : vector<1x128xf32>
    %419 = arith.mulf %377, %418 : vector<1x128xf32>
    %420 = arith.mulf %388, %418 : vector<1x128xf32>
    %421 = arith.mulf %399, %418 : vector<1x128xf32>
    %422 = arith.mulf %410, %418 : vector<1x128xf32>
    %423 = vector.extract_strided_slice %9 {offsets = [0, 0], sizes = [1, 1], strides = [1, 1]} : vector<1x3xf32> to vector<1x1xf32>
    %424 = vector.broadcast %423 : vector<1x1xf32> to vector<1x128xf32>
    %425 = arith.subf %2, %424 : vector<1x128xf32>
    %426 = vector.extract_strided_slice %9 {offsets = [0, 1], sizes = [1, 1], strides = [1, 1]} : vector<1x3xf32> to vector<1x1xf32>
    %427 = vector.broadcast %426 : vector<1x1xf32> to vector<1x128xf32>
    %428 = arith.subf %3, %427 : vector<1x128xf32>
    %429 = vector.extract_strided_slice %9 {offsets = [0, 2], sizes = [1, 1], strides = [1, 1]} : vector<1x3xf32> to vector<1x1xf32>
    %430 = vector.broadcast %429 : vector<1x1xf32> to vector<1x128xf32>
    %431 = arith.subf %4, %430 : vector<1x128xf32>
    %432 = arith.mulf %420, %431 : vector<1x128xf32>
    %433 = arith.mulf %421, %428 : vector<1x128xf32>
    %434 = arith.subf %432, %433 : vector<1x128xf32>
    %cst_76 = arith.constant 2.000000e+00 : f32
    %435 = vector.broadcast %cst_76 : f32 to vector<1x128xf32>
    %436 = arith.mulf %435, %434 : vector<1x128xf32>
    %437 = arith.mulf %421, %425 : vector<1x128xf32>
    %438 = arith.mulf %419, %431 : vector<1x128xf32>
    %439 = arith.subf %437, %438 : vector<1x128xf32>
    %cst_77 = arith.constant 2.000000e+00 : f32
    %440 = vector.broadcast %cst_77 : f32 to vector<1x128xf32>
    %441 = arith.mulf %440, %439 : vector<1x128xf32>
    %442 = arith.mulf %419, %428 : vector<1x128xf32>
    %443 = arith.mulf %420, %425 : vector<1x128xf32>
    %444 = arith.subf %442, %443 : vector<1x128xf32>
    %cst_78 = arith.constant 2.000000e+00 : f32
    %445 = vector.broadcast %cst_78 : f32 to vector<1x128xf32>
    %446 = arith.mulf %445, %444 : vector<1x128xf32>
    %447 = arith.mulf %422, %436 : vector<1x128xf32>
    %448 = arith.addf %425, %447 : vector<1x128xf32>
    %449 = arith.mulf %420, %446 : vector<1x128xf32>
    %450 = arith.mulf %421, %441 : vector<1x128xf32>
    %451 = arith.subf %449, %450 : vector<1x128xf32>
    %452 = arith.addf %448, %451 : vector<1x128xf32>
    %453 = arith.mulf %422, %441 : vector<1x128xf32>
    %454 = arith.addf %428, %453 : vector<1x128xf32>
    %455 = arith.mulf %421, %436 : vector<1x128xf32>
    %456 = arith.mulf %419, %446 : vector<1x128xf32>
    %457 = arith.subf %455, %456 : vector<1x128xf32>
    %458 = arith.addf %454, %457 : vector<1x128xf32>
    %459 = arith.mulf %422, %446 : vector<1x128xf32>
    %460 = arith.addf %431, %459 : vector<1x128xf32>
    %461 = arith.mulf %419, %441 : vector<1x128xf32>
    %462 = arith.mulf %420, %436 : vector<1x128xf32>
    %463 = arith.subf %461, %462 : vector<1x128xf32>
    %464 = arith.addf %460, %463 : vector<1x128xf32>
    %cst_79 = arith.constant 9.810070e+00 : f32
    %465 = vector.broadcast %cst_79 : f32 to vector<1x128xf32>
    %466 = arith.subf %464, %465 : vector<1x128xf32>
    %467 = arith.mulf %452, %1 : vector<1x128xf32>
    %468 = arith.mulf %458, %1 : vector<1x128xf32>
    %469 = arith.mulf %466, %1 : vector<1x128xf32>
    %470 = arith.mulf %467, %1 : vector<1x128xf32>
    %471 = arith.mulf %468, %1 : vector<1x128xf32>
    %472 = arith.mulf %469, %1 : vector<1x128xf32>
    %473 = tpu.concatenate %467, %468, %469, %470, %471, %472, %419, %420, %421, %422 in 0 : vector<1x128xf32>, vector<1x128xf32>, vector<1x128xf32>, vector<1x128xf32>, vector<1x128xf32>, vector<1x128xf32>, vector<1x128xf32>, vector<1x128xf32>, vector<1x128xf32>, vector<1x128xf32> -> vector<10x128xf32>
    %c0_80 = arith.constant 0 : index
    %c0_81 = arith.constant 0 : index
    %474 = vector.load %arg6[%c0_80, %c0_81] : memref<4x1xi32, #tpu.memory_space<vmem>>, vector<4x1xi32>
    %475 = tpu.iota {dimensions = array<i32: 1>} : vector<4x128xi32>
    %476 = vector.broadcast %474 : vector<4x1xi32> to vector<4x128xi32>
    %477 = arith.cmpi sle, %475, %476 : vector<4x128xi32>
    %cst_82 = arith.constant 1.000000e+00 : f32
    %cst_83 = arith.constant 0.000000e+00 : f32
    %478 = vector.broadcast %cst_82 : f32 to vector<4x128xf32>
    %479 = vector.broadcast %cst_83 : f32 to vector<4x128xf32>
    %480 = arith.select %477, %478, %479 : vector<4x128xi1>, vector<4x128xf32>
    %c1_i32_84 = arith.constant 1 : i32
    %481 = vector.broadcast %c1_i32_84 : i32 to vector<4x1xi32>
    %482 = arith.addi %474, %481 : vector<4x1xi32>
    %483 = vector.broadcast %482 : vector<4x1xi32> to vector<4x128xi32>
    %484 = arith.cmpi eq, %475, %483 : vector<4x128xi32>
    %cst_85 = arith.constant 1.000000e+00 : f32
    %cst_86 = arith.constant 0.000000e+00 : f32
    %485 = vector.broadcast %cst_85 : f32 to vector<4x128xf32>
    %486 = vector.broadcast %cst_86 : f32 to vector<4x128xf32>
    %487 = arith.select %484, %485, %486 : vector<4x128xi1>, vector<4x128xf32>
    %488 = vector.broadcast %1 : vector<1x128xf32> to vector<4x128xf32>
    %489 = arith.mulf %480, %488 : vector<4x128xf32>
    %cst_87 = arith.constant dense<0.000000e+00> : vector<4xf32>
    %490 = vector.multi_reduction <add>, %489, %cst_87 [1] : vector<4x128xf32> to vector<4xf32>
    %491 = vector.shape_cast %490 : vector<4xf32> to vector<4x1xf32>
    %492 = vector.broadcast %491 : vector<4x1xf32> to vector<4x128xf32>
    %493 = vector.broadcast %8 : vector<1x128xf32> to vector<4x128xf32>
    %494 = arith.subf %492, %493 : vector<4x128xf32>
    %495 = arith.mulf %480, %494 : vector<4x128xf32>
    %496 = tpu.concatenate %480, %495, %487 in 0 : vector<4x128xf32>, vector<4x128xf32>, vector<4x128xf32> -> vector<12x128xf32>
    %cst_88 = arith.constant dense<0.000000e+00> : vector<12x10xf32>
    %497 = tpu.matmul %496, %473, %cst_88 {dimension_numbers = #tpu.dot_dimension_numbers<[1], [1], [0], [0], [0, 0, 1, 0], [], []>} : vector<12x128xf32>, vector<10x128xf32>, vector<12x10xf32> -> vector<12x10xf32>
    %498 = vector.extract_strided_slice %497 {offsets = [0, 3], sizes = [4, 3], strides = [1, 1]} : vector<12x10xf32> to vector<4x3xf32>
    %499 = vector.extract_strided_slice %497 {offsets = [4, 0], sizes = [4, 3], strides = [1, 1]} : vector<12x10xf32> to vector<4x3xf32>
    %500 = vector.extract_strided_slice %497 {offsets = [8, 6], sizes = [4, 4], strides = [1, 1]} : vector<12x10xf32> to vector<4x4xf32>
    %501 = vector.broadcast %19 : vector<1x1xf32> to vector<4x1xf32>
    %502 = arith.mulf %501, %491 : vector<4x1xf32>
    %503 = vector.broadcast %16 : vector<1x1xf32> to vector<4x1xf32>
    %504 = arith.addf %503, %502 : vector<4x1xf32>
    %505 = vector.extract_strided_slice %499 {offsets = [0, 0], sizes = [4, 1], strides = [1, 1]} : vector<4x3xf32> to vector<4x1xf32>
    %506 = arith.addf %504, %505 : vector<4x1xf32>
    %507 = vector.extract_strided_slice %498 {offsets = [0, 0], sizes = [4, 1], strides = [1, 1]} : vector<4x3xf32> to vector<4x1xf32>
    %cst_89 = arith.constant 5.000000e-01 : f32
    %508 = vector.broadcast %cst_89 : f32 to vector<4x1xf32>
    %509 = arith.mulf %508, %507 : vector<4x1xf32>
    %510 = arith.addf %506, %509 : vector<4x1xf32>
    %511 = vector.broadcast %20 : vector<1x1xf32> to vector<4x1xf32>
    %512 = arith.mulf %511, %491 : vector<4x1xf32>
    %513 = vector.broadcast %17 : vector<1x1xf32> to vector<4x1xf32>
    %514 = arith.addf %513, %512 : vector<4x1xf32>
    %515 = vector.extract_strided_slice %499 {offsets = [0, 1], sizes = [4, 1], strides = [1, 1]} : vector<4x3xf32> to vector<4x1xf32>
    %516 = arith.addf %514, %515 : vector<4x1xf32>
    %517 = vector.extract_strided_slice %498 {offsets = [0, 1], sizes = [4, 1], strides = [1, 1]} : vector<4x3xf32> to vector<4x1xf32>
    %cst_90 = arith.constant 5.000000e-01 : f32
    %518 = vector.broadcast %cst_90 : f32 to vector<4x1xf32>
    %519 = arith.mulf %518, %517 : vector<4x1xf32>
    %520 = arith.addf %516, %519 : vector<4x1xf32>
    %521 = vector.broadcast %21 : vector<1x1xf32> to vector<4x1xf32>
    %522 = arith.mulf %521, %491 : vector<4x1xf32>
    %523 = vector.broadcast %18 : vector<1x1xf32> to vector<4x1xf32>
    %524 = arith.addf %523, %522 : vector<4x1xf32>
    %525 = vector.extract_strided_slice %499 {offsets = [0, 2], sizes = [4, 1], strides = [1, 1]} : vector<4x3xf32> to vector<4x1xf32>
    %526 = arith.addf %524, %525 : vector<4x1xf32>
    %527 = vector.extract_strided_slice %498 {offsets = [0, 2], sizes = [4, 1], strides = [1, 1]} : vector<4x3xf32> to vector<4x1xf32>
    %cst_91 = arith.constant 5.000000e-01 : f32
    %528 = vector.broadcast %cst_91 : f32 to vector<4x1xf32>
    %529 = arith.mulf %528, %527 : vector<4x1xf32>
    %530 = arith.addf %526, %529 : vector<4x1xf32>
    %531 = vector.extract_strided_slice %500 {offsets = [0, 0], sizes = [4, 1], strides = [1, 1]} : vector<4x4xf32> to vector<4x1xf32>
    %532 = vector.extract_strided_slice %500 {offsets = [0, 1], sizes = [4, 1], strides = [1, 1]} : vector<4x4xf32> to vector<4x1xf32>
    %533 = vector.extract_strided_slice %500 {offsets = [0, 2], sizes = [4, 1], strides = [1, 1]} : vector<4x4xf32> to vector<4x1xf32>
    %534 = vector.extract_strided_slice %500 {offsets = [0, 3], sizes = [4, 1], strides = [1, 1]} : vector<4x4xf32> to vector<4x1xf32>
    %c0_92 = arith.constant 0 : index
    %c0_93 = arith.constant 0 : index
    %535 = vector.load %arg4[%c0_92, %c0_93] : memref<4x4xf32, #tpu.memory_space<vmem>>, vector<4x4xf32>
    %536 = vector.extract_strided_slice %535 {offsets = [0, 0], sizes = [4, 1], strides = [1, 1]} : vector<4x4xf32> to vector<4x1xf32>
    %cst_94 = arith.constant 0.000000e+00 : f32
    %537 = vector.broadcast %cst_94 : f32 to vector<4x1xf32>
    %538 = arith.subf %537, %536 : vector<4x1xf32>
    %539 = vector.extract_strided_slice %535 {offsets = [0, 1], sizes = [4, 1], strides = [1, 1]} : vector<4x4xf32> to vector<4x1xf32>
    %cst_95 = arith.constant 0.000000e+00 : f32
    %540 = vector.broadcast %cst_95 : f32 to vector<4x1xf32>
    %541 = arith.subf %540, %539 : vector<4x1xf32>
    %542 = vector.extract_strided_slice %535 {offsets = [0, 2], sizes = [4, 1], strides = [1, 1]} : vector<4x4xf32> to vector<4x1xf32>
    %cst_96 = arith.constant 0.000000e+00 : f32
    %543 = vector.broadcast %cst_96 : f32 to vector<4x1xf32>
    %544 = arith.subf %543, %542 : vector<4x1xf32>
    %545 = vector.extract_strided_slice %535 {offsets = [0, 3], sizes = [4, 1], strides = [1, 1]} : vector<4x4xf32> to vector<4x1xf32>
    %546 = arith.mulf %545, %531 : vector<4x1xf32>
    %547 = arith.mulf %538, %534 : vector<4x1xf32>
    %548 = arith.addf %546, %547 : vector<4x1xf32>
    %549 = arith.mulf %541, %533 : vector<4x1xf32>
    %550 = arith.addf %548, %549 : vector<4x1xf32>
    %551 = arith.mulf %544, %532 : vector<4x1xf32>
    %552 = arith.subf %550, %551 : vector<4x1xf32>
    %553 = arith.mulf %545, %532 : vector<4x1xf32>
    %554 = arith.mulf %538, %533 : vector<4x1xf32>
    %555 = arith.subf %553, %554 : vector<4x1xf32>
    %556 = arith.mulf %541, %534 : vector<4x1xf32>
    %557 = arith.addf %555, %556 : vector<4x1xf32>
    %558 = arith.mulf %544, %531 : vector<4x1xf32>
    %559 = arith.addf %557, %558 : vector<4x1xf32>
    %560 = arith.mulf %545, %533 : vector<4x1xf32>
    %561 = arith.mulf %538, %532 : vector<4x1xf32>
    %562 = arith.addf %560, %561 : vector<4x1xf32>
    %563 = arith.mulf %541, %531 : vector<4x1xf32>
    %564 = arith.subf %562, %563 : vector<4x1xf32>
    %565 = arith.mulf %544, %534 : vector<4x1xf32>
    %566 = arith.addf %564, %565 : vector<4x1xf32>
    %567 = arith.mulf %545, %534 : vector<4x1xf32>
    %568 = arith.mulf %538, %531 : vector<4x1xf32>
    %569 = arith.subf %567, %568 : vector<4x1xf32>
    %570 = arith.mulf %541, %532 : vector<4x1xf32>
    %571 = arith.subf %569, %570 : vector<4x1xf32>
    %572 = arith.mulf %544, %533 : vector<4x1xf32>
    %573 = arith.subf %571, %572 : vector<4x1xf32>
    %574 = arith.mulf %552, %552 : vector<4x1xf32>
    %575 = arith.mulf %559, %559 : vector<4x1xf32>
    %576 = arith.addf %574, %575 : vector<4x1xf32>
    %577 = arith.mulf %566, %566 : vector<4x1xf32>
    %578 = arith.addf %576, %577 : vector<4x1xf32>
    %579 = math.sqrt %578 : vector<4x1xf32>
    %cst_97 = arith.constant 0.000000e+00 : f32
    %580 = vector.broadcast %cst_97 : f32 to vector<4x1xf32>
    %581 = arith.cmpf olt, %573, %580 : vector<4x1xf32>
    %cst_98 = arith.constant -1.000000e+00 : f32
    %cst_99 = arith.constant 1.000000e+00 : f32
    %582 = vector.broadcast %cst_98 : f32 to vector<4x1xf32>
    %583 = vector.broadcast %cst_99 : f32 to vector<4x1xf32>
    %584 = arith.select %581, %582, %583 : vector<4x1xi1>, vector<4x1xf32>
    %585 = arith.mulf %573, %584 : vector<4x1xf32>
    %586 = math.atan2 %579, %585 : vector<4x1xf32>
    %cst_100 = arith.constant 2.000000e+00 : f32
    %587 = vector.broadcast %cst_100 : f32 to vector<4x1xf32>
    %588 = arith.mulf %587, %586 : vector<4x1xf32>
    %cst_101 = arith.constant 9.99999993E-9 : f32
    %589 = vector.broadcast %cst_101 : f32 to vector<4x1xf32>
    %590 = arith.maximumf %585, %589 : vector<4x1xf32>
    %cst_102 = arith.constant 9.99999997E-7 : f32
    %591 = vector.broadcast %cst_102 : f32 to vector<4x1xf32>
    %592 = arith.cmpf olt, %579, %591 : vector<4x1xf32>
    %cst_103 = arith.constant 2.000000e+00 : f32
    %593 = vector.broadcast %cst_103 : f32 to vector<4x1xf32>
    %594 = arith.divf %593, %590 : vector<4x1xf32>
    %cst_104 = arith.constant 2.000000e+00 : f32
    %595 = vector.broadcast %cst_104 : f32 to vector<4x1xf32>
    %596 = arith.mulf %595, %578 : vector<4x1xf32>
    %cst_105 = arith.constant 3.000000e+00 : f32
    %597 = vector.broadcast %cst_105 : f32 to vector<4x1xf32>
    %598 = arith.mulf %597, %590 : vector<4x1xf32>
    %599 = arith.mulf %598, %590 : vector<4x1xf32>
    %600 = arith.mulf %599, %590 : vector<4x1xf32>
    %601 = arith.divf %596, %600 : vector<4x1xf32>
    %602 = arith.subf %594, %601 : vector<4x1xf32>
    %cst_106 = arith.constant 9.99999993E-9 : f32
    %603 = vector.broadcast %cst_106 : f32 to vector<4x1xf32>
    %604 = arith.maximumf %579, %603 : vector<4x1xf32>
    %605 = arith.divf %588, %604 : vector<4x1xf32>
    %606 = arith.select %592, %602, %605 : vector<4x1xi1>, vector<4x1xf32>
    %607 = arith.mulf %606, %606 : vector<4x1xf32>
    %608 = arith.mulf %607, %578 : vector<4x1xf32>
    %cst_107 = arith.constant dense<0.000000e+00> : vector<1xf32>
    %609 = vector.multi_reduction <add>, %608, %cst_107 [0] : vector<4x1xf32> to vector<1xf32>
    %610 = vector.shape_cast %609 : vector<1xf32> to vector<1x1xf32>
    %611 = math.sqrt %610 : vector<1x1xf32>
    %c0_108 = arith.constant 0 : index
    %c0_109 = arith.constant 0 : index
    %612 = vector.load %arg5[%c0_108, %c0_109] : memref<4x3xf32, #tpu.memory_space<vmem>>, vector<4x3xf32>
    %613 = vector.extract_strided_slice %612 {offsets = [0, 0], sizes = [4, 1], strides = [1, 1]} : vector<4x3xf32> to vector<4x1xf32>
    %614 = arith.subf %613, %510 : vector<4x1xf32>
    %615 = vector.extract_strided_slice %612 {offsets = [0, 1], sizes = [4, 1], strides = [1, 1]} : vector<4x3xf32> to vector<4x1xf32>
    %616 = arith.subf %615, %520 : vector<4x1xf32>
    %617 = vector.extract_strided_slice %612 {offsets = [0, 2], sizes = [4, 1], strides = [1, 1]} : vector<4x3xf32> to vector<4x1xf32>
    %618 = arith.subf %617, %530 : vector<4x1xf32>
    %619 = arith.mulf %614, %614 : vector<4x1xf32>
    %620 = arith.mulf %616, %616 : vector<4x1xf32>
    %621 = arith.addf %619, %620 : vector<4x1xf32>
    %622 = arith.mulf %618, %618 : vector<4x1xf32>
    %623 = arith.addf %621, %622 : vector<4x1xf32>
    %cst_110 = arith.constant dense<0.000000e+00> : vector<1xf32>
    %624 = vector.multi_reduction <add>, %623, %cst_110 [0] : vector<4x1xf32> to vector<1xf32>
    %625 = vector.shape_cast %624 : vector<1xf32> to vector<1x1xf32>
    %cst_111 = arith.constant 1.200000e+01 : f32
    %626 = vector.broadcast %cst_111 : f32 to vector<1x1xf32>
    %627 = arith.divf %625, %626 : vector<1x1xf32>
    %628 = arith.addf %611, %627 : vector<1x1xf32>
    %c0_112 = arith.constant 0 : index
    %c0_113 = arith.constant 0 : index
    %629 = vector.load %arg7[%c0_112, %c0_113] : memref<1x1xf32, #tpu.memory_space<vmem>>, vector<1x1xf32>
    tpu.vector_store %arg7[%c0_112, %c0_113], %628 {strides = array<i32>} : memref<1x1xf32, #tpu.memory_space<vmem>>, vector<1x1xf32>,
    return
  }
}

</mosaic_0001>

<bundles_post_ra>
// kernel: tpu_custom_call.1
= control target key start
LH: loop header
LB: loop body
LE: loop exit
PB: predicated region body
PF: predicated region fallthrough
CT: control target
= control target key end

     0   :  { %12 = vsyncpa [#allocation3], 0  ;;  %s1814_s0 = inlined_call_operand.hbm [shape: f32[8,128], index: 0, kind: input, shape index: {}]   ;;  %s1815_s1 = inlined_call_operand.hbm [shape: f32[1,3], index: 1, kind: input, shape index: {}]   ;;  %s1816_s2 = inlined_call_operand.vmem [shape: f32[1,3], index: 2, kind: input, shape index: {}]   ;;  %s1817_s3 = inlined_call_operand.vmem [shape: f32[1,10], index: 3, kind: input, shape index: {}]   ;;  %s1818_s4 = inlined_call_operand.vmem [shape: f32[4,4], index: 4, kind: input, shape index: {}]   ;;  %s1819_s5 = inlined_call_operand.vmem [shape: f32[4,3], index: 5, kind: input, shape index: {}]   ;;  %s1820_s6 = inlined_call_operand.vmem [shape: s32[4,1], index: 6, kind: input, shape index: {}]   ;;  %s1821_s7 = inlined_call_operand.hbm [shape: f32[1,1], index: 7, kind: output, shape index: {}]  }
   0x1   :  { %13 = vsyncpa [#allocation6], 0 }
   0x2   :  { %14 = vsyncpa [#allocation4], 0  ;;  %s1393_s24 = smov [#allocation2]   ;;  %s1394_s26 = smov [#allocation5]  }
   0x3   :  { %s21_s25 = sshll.u32 %s1393_s24, 4  ;;  %s31_s27 = sshll.u32 %s1394_s26, 4  ;;  %s22_s25 = int_to_ptr.vmem [resolvable:$true] %s21_s25  ;;  %s32_s27 = int_to_ptr.vmem [resolvable:$true] %s31_s27 }
   0x4   :  { %s1321_s30 = scalar_lea.hbm %s1814_s0, 128 }
   0x5   :  { %p1322_p0 = scmp.ne.s32.totalorder %s1814_s0, %s1321_s30  ;;  %p1325_p1 = scmp.lt.u32.totalorder %s1321_s30, %s1814_s0 }
   0x7   :  { %p1327_p2 = pnand %p1325_p1, %p1322_p0 }
   0x9   :  { %1330 = shalt.err (!%p1327_p2)
}
   0xa   :  { %s1331_s12 = scalar_lea.vmem %s22_s25, 128  ;;  %p1336_p4 = scmp.lt.s32.totalorder %s22_s25, %s22_s25 }
   0xb   :  { %p1332_p3 = scmp.ne.s32.totalorder %s22_s25, %s1331_s12  ;;  %p1337_p5 = scmp.lt.s32.totalorder %s1331_s12, %s1331_s12 }
   0xd   :  { %p1338_p6 = por %p1337_p5, %p1336_p4 }
   0xf   :  { %p1339_p7 = pnand %p1338_p6, %p1332_p3 }
  0x11   :  { %1342 = shalt.err (!%p1339_p7)
}
  0x12   :  { %24 = dma.hbm_to_vmem [thread:$0]  %s1814_s0, 128, %s22_s25, [#allocation3]  }
  0x13   :  { %s1343_s17 = scalar_lea.hbm %s1815_s1, 16 }
  0x14   :  { %p1344_p8 = scmp.ne.s32.totalorder %s1815_s1, %s1343_s17  ;;  %p1347_p9 = scmp.lt.u32.totalorder %s1343_s17, %s1815_s1 }
  0x16   :  { %p1349_p10 = pnand %p1347_p9, %p1344_p8 }
  0x18   :  { %1352 = shalt.err (!%p1349_p10)
}
  0x19   :  { %s1353_s22 = scalar_lea.vmem %s32_s27, 16  ;;  %s1357_s23 = scalar_lea.vmem %s32_s27, 32 }
  0x1a   :  { %p1354_p11 = scmp.ne.s32.totalorder %s32_s27, %s1353_s22  ;;  %p1358_p12 = scmp.lt.s32.totalorder %s32_s27, %s32_s27 }
  0x1b   :  { %p1359_p13 = scmp.lt.s32.totalorder %s1357_s23, %s1353_s22 }
  0x1d   :  { %p1360_p0 = por %p1359_p13, %p1358_p12 }
  0x1f   :  { %p1361_p1 = pnand %p1360_p0, %p1354_p11 }
  0x21   :  { %1364 = shalt.err (!%p1361_p1)
}
  0x22   :  { %34 = dma.hbm_to_vmem [thread:$0]  %s1815_s1, 16, %s32_s27, [#allocation6]  }
  0x23   :  { %1387 = dma.done.wait [#allocation3], 128  }
  0x24   :  { %1388 = vsyncadd [#allocation3], 4294967168 }
  0x25   :  { %1389 = dma.done.wait [#allocation6], 16  }
  0x26   :  { %1390 = vsyncadd [#allocation6], 4294967280  ;;  %v1395_v0 = vmov 1   ;;  %v1396_v1 = vmov 2   ;;  %v53_v2 = vld [vmem:[%s1816_s2] sm:$0x1]  ;;  %v60_v4 = vlaneseq }
  0x27   :  { %1288 = vset.pattern.permute.xlu0 %v1395_v0  ;;  %1290 = vset.pattern.permute.xlu1 %v1396_v1  ;;  %v1397_v3 = vmov 0   ;;  %v1502_v7 = vld [vmem:[#allocation2] sm:$0xff]  ;;  %v1398_v46 = vmov 683565275   ;;  %v1399_v48 = vmov 2475754826  }
  0x28   :  { %70 = vperm.xlu0 %1288, %v53_v2   ;;  %82 = vperm.xlu1 %1290, %v53_v2   ;;  %v1497_v5 = vshrl.u32 %v60_v4, 7  ;;  %v78_v11 = vrot.slane %v1502_v7, 3  ;;  %v90_v13 = vrot.slane %v1502_v7, 2  ;;  %v66_v20 = vrot.slane %v1502_v7, 4  ;;  %s1404_s1 = smov 1   ;;  %s1405_s2 = smov 2  }
  0x29   :  { %v1400_v51 = vmov 2131351028   ;;  %v1401_v54 = vmov 2102212464   ;;  %v1402_v57 = vmov 920167782  }
  0x2a   :  { %v1500_v6 = vsub.s32 0, %v1497_v5  ;;  %v1403_v60 = vmov 1326507024   ;;  %s1406_s27 = smov 4   ;;  %s1407_s28 = smov 8  }
  0x2b   :  { %s1408_s29 = smov 16   ;;  %s1410_s30 = smov 32  }
  0x2c   :  { %1289 = vset.pattern.permute.xlu0 %v1397_v3  ;;  %s1415_s12 = smov 124   ;;  %s1416_s13 = smov 119  }
  0x2d   :  { %57 = vperm.xlu0 %1289, %v53_v2   ;;  %s1417_s14 = smov 120   ;;  %s1418_s15 = smov 121  }
  0x2e   :  { %s1419_s16 = smov 123   ;;  %s1420_s17 = smov 122  }
  0x2f   :  { %s1421_s20 = smov 3   ;;  %s1422_s22 = smov 126  }
  0x30   :  { %s1423_s23 = smov 127  }
  0xa7   :  { %v71_v8 = vpop.permute.xlu0 %70  ;;  %v83_v9 = vpop.permute.xlu1 %82 }
  0xa8   :  { %v76_v10 = vrot.slane %v71_v8, %v1500_v6  ;;  %v88_v12 = vrot.slane %v83_v9, %v1500_v6 }
  0xaa   :  { %v77_v14 = vsub.f32 %v1502_v7, %v76_v10  ;;  %v89_v15 = vsub.f32 %v1502_v7, %v88_v12 }
  0xac   :  { %v1510_v16 = vmul.f32 %v78_v11, %v77_v14  ;;  %v1512_v17 = vmul.f32 %v90_v13, %v89_v15  ;;  %v58_v18 = vpop.permute.xlu0 %57 }
  0xad   :  { %v63_v19 = vrot.slane %v58_v18, %v1500_v6 }
  0xae   :  { %v94_v21 = vmul.f32 %v1510_v16, %v1510_v16  ;;  %v99_v22 = vmul.f32 %v1512_v17, %v1512_v17 }
  0xaf   :  { %v64_v23 = vsub.f32 %v1502_v7, %v63_v19 }
  0xb0   :  { %v96_v25 = vrot.slane %v94_v21, 1  ;;  %v101_v26 = vrot.slane %v99_v22, 2 }
  0xb1   :  { %v1521_v24 = vmul.f32 %v66_v20, %v64_v23 }
  0xb3   :  { %v93_v27 = vmul.f32 %v1521_v24, %v1521_v24 }
  0xb5   :  { %v98_v28 = vadd.f32 %v96_v25, %v93_v27 }
  0xb7   :  { %v1525_v29 = vadd.f32 %v101_v26, %v98_v28 }
  0xb9   :  { %1298 = vrsqrt.f32 %v1525_v29  ;;  %vm106_vm0 = vcmp.eq.f32.partialorder %v1525_v29, inf  ;;  %v109_v32 = vand.u32 2147483648, %v1525_v29  ;;  %vm108_vm1 = vcmp.eq.f32.partialorder %v1525_v29, 0.0 }
  0xc3   :  { %v1299_v30 = vpop.eup %1298 }
  0xc4   :  { %v105_v31 = vmul.f32 %v1299_v30, %v1525_v29 }
  0xc6   :  { %v107_v33 = vsel %vm106_vm0, %v1525_v29, %v105_v31 }
  0xc7   :  { %v1533_v34 = vsel %vm108_vm1, %v109_v32, %v107_v33 }
  0xc8   :  { %v1536_v35 = vmul.f32 0.5, %v1533_v34 }
  0xca   :  { %v121_v36 = vand.u32 2139095040, %v1536_v35  ;;  %v118_v40 = vand.u32 2147483647, %v1536_v35  ;;  %vm120_vm9 = vcmp.lt.s32.totalorder %v1536_v35, 0  ;;  %vm210_vm1 = vweird.f32 %v1536_v35 }
  0xcc   :  { %v122_v37 = vshrl.u32 %v121_v36, 23  ;;  %v125_v43 = vand.u32 8388607, %v118_v40  ;;  %vm119_vm10 = vcmp.le.f32.partialorder %v118_v40, 0.7853982 }
  0xcd   :  { %v116_v40 = vmul.f32 0.020833334, %v1525_v29  ;;  %v329_v29 = vrot.slane %v1510_v16, 1  ;;  %v1568_v16 = vand.u32 127, %v60_v4 }
  0xce   :  { %v1226_v38 = vadd.s32 4294967169, %v122_v37  ;;  %v126_v62 = vor.u32 8388608, %v125_v43 }
  0xd0   :  { %v128_v39 = vadd.s32 1, %v1226_v38  ;;  %v166_v21 = vshll.u32 %v126_v62, 8 }
  0xd2   :  { %vm129_vm2 = vcmp.gt.s32.totalorder %v128_v39, 0 }
  0xd3   :  { %v130_v41 = vsel %vm129_vm2, %v128_v39, 0  ;;  %vm112_vm2 = vcmp.lt.f32.partialorder %v1533_v34, 0.0001 }
  0xd4   :  { %v132_v42 = vand.u32 31, %v130_v41  ;;  %v131_v45 = vshrl.u32 %v130_v41, 5 }
  0xd6   :  { %v133_v44 = vsub.s32 32, %v132_v42  ;;  %v135_v47 = vshll.u32 %v1398_v46, %v132_v42  ;;  %v138_v49 = vshll.u32 %v1399_v48, %v132_v42  ;;  %v141_v53 = vshll.u32 %v1400_v51, %v132_v42 }
  0xd7   :  { %v144_v56 = vshll.u32 %v1401_v54, %v132_v42  ;;  %v147_v59 = vshll.u32 %v1402_v57, %v132_v42  ;;  %vm150_vm3 = vcmp.lt.s32.totalorder %v131_v45, 1  ;;  %vm153_vm4 = vcmp.lt.s32.totalorder %v131_v45, 4 }
  0xd8   :  { %v136_v50 = vshrl.u32 %v1399_v48, %v133_v44  ;;  %v139_v52 = vshrl.u32 %v1400_v51, %v133_v44  ;;  %v142_v55 = vshrl.u32 %v1401_v54, %v133_v44  ;;  %v145_v58 = vshrl.u32 %v1402_v57, %v133_v44 }
  0xd9   :  { %v148_v61 = vshrl.u32 %v1403_v60, %v133_v44  ;;  %v134_v14 = vshrl.u32 %v1398_v46, %v133_v44  ;;  %vm152_vm5 = vcmp.lt.s32.totalorder %v131_v45, 3  ;;  %vm151_vm6 = vcmp.lt.s32.totalorder %v131_v45, 2 }
  0xda   :  { %v137_v63 = vor.u32 %v136_v50, %v135_v47  ;;  %v140_v2 = vor.u32 %v139_v52, %v138_v49  ;;  %v143_v8 = vor.u32 %v142_v55, %v141_v53  ;;  %v146_v9 = vor.u32 %v145_v58, %v144_v56 }
  0xdb   :  { %v149_v10 = vor.u32 %v148_v61, %v147_v59 }
  0xdc   :  { %v155_v11 = vsel %vm153_vm4, %v143_v8, 2102212464  ;;  %v158_v12 = vsel %vm150_vm3, %v137_v63, %v140_v2  ;;  %v162_v13 = vsel %vm150_vm3, %v140_v2, %v143_v8  ;;  %v159_v15 = vsel %vm153_vm4, %v146_v9, 920167782 }
  0xdd   :  { %v163_v18 = vsel %vm153_vm4, %v149_v10, 1326507024  ;;  %v160_v19 = vsel %vm152_vm5, %v143_v8, %v159_v15  ;;  %v154_v22 = vsel %vm150_vm3, %v134_v14, %v137_v63  ;;  %v156_v23 = vsel %vm152_vm5, %v140_v2, %v155_v11 }
  0xde   :  { %v164_v20 = vsel %vm152_vm5, %v146_v9, %v163_v18  ;;  %v161_v25 = vsel %vm151_vm6, %v158_v12, %v160_v19  ;;  %v157_v32 = vsel %vm151_vm6, %v154_v22, %v156_v23  ;;  %v113_v10 = vmax.f32 %v1533_v34, 1e-08 }
  0xdf   :  { %v165_v26 = vsel %vm151_vm6, %v162_v13, %v164_v20  ;;  %v1545_v30 = vmul.u32.u64.low %v166_v21, %v161_v25  ;;  %v1546_v31 = vmul.u32.u64.high %v166_v21, %v161_v25, %v1545_v30  ;;  %v173_v36 = vmul.u32 %v166_v21, %v157_v32 }
  0xe0   :  { %v1542_v27 = vmul.u32.u64.low %v166_v21, %v165_v26  ;;  %v1543_v28 = vmul.u32.u64.high %v166_v21, %v165_v26, %v1542_v27  ;;  %vm338_vm3 = vcmp.ge.s32.totalorder %v1568_v16, 1  ;;  %vm403_vm4 = vcmp.ge.s32.totalorder %v1568_v16, 2 }
  0xe1   :  { %v176_v33 = vadd.s32 1, %v1546_v31  ;;  %vm444_vm5 = vcmp.ge.s32.totalorder %v1568_v16, 4  ;;  %vm485_vm6 = vcmp.ge.s32.totalorder %v1568_v16, 8 }
  0xe2   :  { %vm175_vm7 = vc.u32 %v1543_v28, %v1545_v30  ;;  %v174_v49 = vadd.s32 %v1545_v30, %v1543_v28 }
  0xe3   :  { %v177_v37 = vsel %vm175_vm7, %v176_v33, %v1546_v31  ;;  %v117_v33 = vsub.f32 0.5, %v116_v40  ;;  %vm526_vm7 = vcmp.ge.s32.totalorder %v1568_v16, 16 }
  0xe4   :  { %v178_v38 = vadd.s32 %v177_v37, %v173_v36  ;;  %v333_v36 = vrot.slane %v1512_v17, 2 }
  0xe6   :  { %v179_v39 = vadd.s32 536870912, %v178_v38 }
  0xe8   :  { %v180_v41 = vshrl.u32 %v179_v39, 30 }
  0xea   :  { %v181_v42 = vshll.u32 %v180_v41, 30  ;;  %v204_v61 = vsub.s32 4, %v180_v41 }
  0xec   :  { %v182_v43 = vsub.s32 %v178_v38, %v181_v42  ;;  %v205_v2 = vsel %vm120_vm9, %v204_v61, %v180_v41 }
  0xed   :  { %v207_v9 = vsel %vm119_vm10, 0, %v205_v2 }
  0xee   :  { %v184_v44 = vsub.s32 0, %v182_v43  ;;  %v211_v11 = vadd.s32 3, %v207_v9  ;;  %v317_v13 = vand.u32 3, %v207_v9 }
  0xf0   :  { %v1227_v45 = vmin.u32 %v184_v44, %v182_v43  ;;  %v212_v12 = vand.u32 3, %v211_v11  ;;  %vm322_vm12 = vcmp.eq.s32.totalorder %v317_v13, 2  ;;  %vm319_vm14 = vcmp.eq.s32.totalorder %v317_v13, 0 }
  0xf1   :  { %vm318_vm0 = vcmp.lt.s32.totalorder %v317_v13, 2 }
  0xf2   :  { %v186_v46 = vclz %v1227_v45  ;;  %vm217_vm11 = vcmp.eq.s32.totalorder %v212_v12, 2  ;;  %vm214_vm13 = vcmp.eq.s32.totalorder %v212_v12, 0  ;;  %vm213_vm15 = vcmp.lt.s32.totalorder %v212_v12, 2 }
  0xf4   :  { %v1228_v47 = vadd.s32 4294967294, %v186_v46 }
  0xf6   :  { %vm1229_vm8 = vcmp.lt.s32.totalorder %v1228_v47, 0 }
  0xf7   :  { %v189_v48 = vsel %vm1229_vm8, 0, %v1228_v47  ;;  %vm567_vm8 = vcmp.ge.s32.totalorder %v1568_v16, 32 }
  0xf8   :  { %v190_v50 = vsub.s32 32, %v189_v48  ;;  %v194_v51 = vsub.s32 4294967266, %v189_v48  ;;  %v191_v52 = vshll.u32 %v182_v43, %v189_v48 }
  0xfa   :  { %v192_v53 = vshrl.u32 %v174_v49, %v190_v50  ;;  %v195_v54 = vadd.s32 127, %v194_v51 }
  0xfc   :  { %v193_v55 = vor.u32 %v192_v53, %v191_v52  ;;  %v196_v56 = vshll.u32 %v195_v54, 23 }
  0xfe   :  { %v197_v57 = vor.u32 4788187, %v196_v56  ;;  %v200_v59 = vcvt.s32.f32 %v193_v55 }
 0x100   :  { %v198_v58 = vand.u32 2147483647, %v197_v57 }
 0x102   :  { %v201_v60 = vmul.f32 %v200_v59, %v198_v58 }
 0x104   :  { %v202_v62 = vxor.u32 2147483648, %v201_v60 }
 0x106   :  { %v203_v63 = vsel %vm120_vm9, %v202_v62, %v201_v60 }
 0x107   :  { %v206_v8 = vsel %vm119_vm10, %v1536_v35, %v203_v63  ;;  %vm853_vm10 = vcmask 1043456  }
 0x108   :  { %1300 = vcosq.f32 %v206_v8 }
 0x109   :  { %1302 = vsinq.f32 %v206_v8 }
 0x10a   :  { %1304 = vrcp.f32 %v113_v10 }
 0x112   :  { %v1301_v14 = vpop.eup %1300 }
 0x113   :  { %v1303_v15 = vpop.eup %1302  ;;  %v218_v18 = vxor.u32 2147483648, %v1301_v14 }
 0x114   :  { %v215_v19 = vxor.u32 2147483648, %v1303_v15  ;;  %v1305_v27 = vpop.eup %1304 }
 0x115   :  { %v324_v20 = vsel %vm322_vm12, %v218_v18, %v1303_v15  ;;  %v219_v21 = vsel %vm217_vm11, %v218_v18, %v1303_v15  ;;  %vm608_vm11 = vcmp.ge.s32.totalorder %v1568_v16, 64  ;;  %vm847_vm12 = vcmask 1040384  }
 0x116   :  { %v321_v22 = vsel %vm319_vm14, %v1301_v14, %v215_v19  ;;  %v216_v23 = vsel %vm214_vm13, %v1301_v14, %v215_v19  ;;  %vm849_vm13 = vcmask 1041408   ;;  %vm851_vm14 = vcmask 1042432  }
 0x117   :  { %v325_v25 = vsel %vm318_vm0, %v321_v22, %v324_v20  ;;  %v220_v26 = vsel %vm213_vm15, %v216_v23, %v219_v21  ;;  %vm855_vm15 = vcmask 1044480   ;;  %vm857_vm0 = vcmask 1045504  }
 0x118   :  { %v326_v28 = vsel %vm210_vm1, nan, %v325_v25  ;;  %v221_v30 = vsel %vm210_vm1, nan, %v220_v26  ;;  %vm859_vm1 = vcmask 1046528  }
 0x119   :  { %v358_v31 = vrot.slane %v326_v28, 4  ;;  %v222_v32 = vmul.f32 %v1305_v27, %v221_v30 }
 0x11b   :  { %360 = vrot.lane.b32.xlu1 %v358_v31, %s1404_s1  ;;  %v223_v37 = vsel %vm112_vm2, %v117_v33, %v222_v32 }
 0x11c   :  { %v331_v38 = vmul.f32 %v329_v29, %v223_v37  ;;  %v327_v35 = vmul.f32 %v223_v37, %v1521_v24  ;;  %v335_v39 = vmul.f32 %v333_v36, %v223_v37 }
 0x11e   :  { %v346_v41 = vrot.slane %v331_v38, 4  ;;  %v340_v42 = vrot.slane %v327_v35, 4  ;;  %v352_v43 = vrot.slane %v335_v39, 4 }
 0x120   :  { %348 = vrot.lane.b32.xlu0 %v346_v41, %s1404_s1  ;;  %342 = vrot.lane.b32.xlu1 %v340_v42, %s1404_s1 }
 0x124   :  { %354 = vrot.lane.b32.xlu1 %v352_v43, %s1404_s1 }
 0x18d   :  { %v361_v17 = vpop.permute.xlu1 %360 }
 0x18e   :  { %v362_v34 = vsel %vm338_vm3, %v361_v17, 1.0 }
 0x18f   :  { %372 = vrot.lane.b32.xlu1 %v362_v34, %s1404_s1 }
 0x192   :  { %v343_v24 = vpop.permute.xlu1 %342  ;;  %v349_v45 = vpop.permute.xlu0 %348 }
 0x193   :  { %v344_v44 = vsel %vm338_vm3, %v343_v24, 0.0  ;;  %v350_v4 = vsel %vm338_vm3, %v349_v45, 0.0 }
 0x194   :  { %363 = vrot.lane.b32.xlu0 %v344_v44, %s1404_s1 }
 0x196   :  { %v355_v46 = vpop.permute.xlu1 %354 }
 0x197   :  { %v356_v47 = vsel %vm338_vm3, %v355_v46, 0.0 }
 0x198   :  { %366 = vrot.lane.b32.xlu0 %v350_v4, %s1404_s1  ;;  %369 = vrot.lane.b32.xlu1 %v356_v47, %s1404_s1 }
 0x201   :  { %v373_v48 = vpop.permute.xlu1 %372 }
 0x202   :  { %v374_v49 = vsel %vm338_vm3, %v373_v48, 1.0 }
 0x203   :  { %v375_v54 = vmul.f32 %v374_v49, %v344_v44  ;;  %v396_v55 = vmul.f32 %v374_v49, %v362_v34  ;;  %v382_v58 = vmul.f32 %v374_v49, %v350_v4  ;;  %v389_v59 = vmul.f32 %v374_v49, %v356_v47 }
 0x206   :  { %v364_v50 = vpop.permute.xlu0 %363 }
 0x207   :  { %v365_v51 = vsel %vm338_vm3, %v364_v50, 0.0 }
 0x208   :  { %v376_v52 = vmul.f32 %v365_v51, %v362_v34  ;;  %v397_v53 = vmul.f32 %v365_v51, %v344_v44  ;;  %v383_v56 = vmul.f32 %v365_v51, %v356_v47  ;;  %v390_v57 = vmul.f32 %v365_v51, %v350_v4 }
 0x20a   :  { %v367_v60 = vpop.permute.xlu0 %366  ;;  %v370_v61 = vpop.permute.xlu1 %369  ;;  %v377_v62 = vadd.f32 %v376_v52, %v375_v54  ;;  %v398_v63 = vsub.f32 %v396_v55, %v397_v53  ;;  %v384_v13 = vsub.f32 %v382_v58, %v383_v56  ;;  %v391_v14 = vadd.f32 %v390_v57, %v389_v59 }
 0x20b   :  { %v368_v2 = vsel %vm338_vm3, %v367_v60, 0.0  ;;  %v371_v8 = vsel %vm338_vm3, %v370_v61, 0.0 }
 0x20c   :  { %v378_v9 = vmul.f32 %v368_v2, %v356_v47  ;;  %v385_v10 = vmul.f32 %v368_v2, %v362_v34  ;;  %v392_v11 = vmul.f32 %v368_v2, %v344_v44  ;;  %v399_v12 = vmul.f32 %v368_v2, %v350_v4 }
 0x20d   :  { %v380_v19 = vmul.f32 %v371_v8, %v350_v4  ;;  %v401_v40 = vmul.f32 %v371_v8, %v356_v47  ;;  %v387_v25 = vmul.f32 %v371_v8, %v344_v44  ;;  %v394_v26 = vmul.f32 %v371_v8, %v362_v34 }
 0x20e   :  { %v379_v15 = vadd.f32 %v378_v9, %v377_v62  ;;  %v400_v18 = vsub.f32 %v398_v63, %v399_v12  ;;  %v386_v20 = vadd.f32 %v385_v10, %v384_v13  ;;  %v393_v21 = vsub.f32 %v391_v14, %v392_v11 }
 0x210   :  { %v381_v22 = vsub.f32 %v379_v15, %v380_v19  ;;  %v402_v23 = vsub.f32 %v400_v18, %v401_v40  ;;  %v388_v27 = vadd.f32 %v387_v25, %v386_v20  ;;  %v395_v28 = vadd.f32 %v394_v26, %v393_v21 }
 0x212   :  { %413 = vrot.lane.b32.xlu1 %v402_v23, %s1405_s2  ;;  %404 = vrot.lane.b32.xlu0 %v381_v22, %s1405_s2 }
 0x216   :  { %410 = vrot.lane.b32.xlu1 %v395_v28, %s1405_s2  ;;  %407 = vrot.lane.b32.xlu0 %v388_v27, %s1405_s2 }
 0x284   :  { %v414_v30 = vpop.permute.xlu1 %413  ;;  %v405_v31 = vpop.permute.xlu0 %404 }
 0x285   :  { %v415_v32 = vsel %vm403_vm4, %v414_v30, 1.0  ;;  %v406_v33 = vsel %vm403_vm4, %v405_v31, 0.0 }
 0x286   :  { %v416_v29 = vmul.f32 %v415_v32, %v381_v22  ;;  %v437_v36 = vmul.f32 %v415_v32, %v402_v23  ;;  %v417_v37 = vmul.f32 %v406_v33, %v402_v23  ;;  %v438_v38 = vmul.f32 %v406_v33, %v381_v22 }
 0x287   :  { %v423_v41 = vmul.f32 %v415_v32, %v388_v27  ;;  %v430_v42 = vmul.f32 %v415_v32, %v395_v28  ;;  %v424_v43 = vmul.f32 %v406_v33, %v395_v28  ;;  %v431_v17 = vmul.f32 %v406_v33, %v388_v27 }
 0x288   :  { %v411_v35 = vpop.permute.xlu1 %410  ;;  %v408_v39 = vpop.permute.xlu0 %407  ;;  %v418_v24 = vadd.f32 %v417_v37, %v416_v29  ;;  %v439_v44 = vsub.f32 %v437_v36, %v438_v38 }
 0x289   :  { %v409_v34 = vsel %vm403_vm4, %v408_v39, 0.0  ;;  %v412_v45 = vsel %vm403_vm4, %v411_v35, 0.0  ;;  %v425_v49 = vsub.f32 %v423_v41, %v424_v43  ;;  %v432_v50 = vadd.f32 %v431_v17, %v430_v42 }
 0x28a   :  { %v419_v46 = vmul.f32 %v409_v34, %v395_v28  ;;  %v426_v4 = vmul.f32 %v409_v34, %v402_v23  ;;  %v433_v47 = vmul.f32 %v409_v34, %v381_v22  ;;  %v440_v48 = vmul.f32 %v409_v34, %v388_v27 }
 0x28b   :  { %v421_v51 = vmul.f32 %v412_v45, %v388_v27  ;;  %v442_v52 = vmul.f32 %v412_v45, %v395_v28  ;;  %v428_v59 = vmul.f32 %v412_v45, %v381_v22  ;;  %v435_v60 = vmul.f32 %v412_v45, %v402_v23 }
 0x28c   :  { %v420_v53 = vadd.f32 %v419_v46, %v418_v24  ;;  %v441_v54 = vsub.f32 %v439_v44, %v440_v48  ;;  %v427_v56 = vadd.f32 %v426_v4, %v425_v49  ;;  %v434_v57 = vsub.f32 %v432_v50, %v433_v47 }
 0x28e   :  { %v422_v55 = vsub.f32 %v420_v53, %v421_v51  ;;  %v443_v58 = vsub.f32 %v441_v54, %v442_v52  ;;  %v429_v61 = vadd.f32 %v428_v59, %v427_v56  ;;  %v436_v62 = vadd.f32 %v435_v60, %v434_v57 }
 0x290   :  { %454 = vrot.lane.b32.xlu1 %v443_v58, %s1406_s27  ;;  %445 = vrot.lane.b32.xlu0 %v422_v55, %s1406_s27 }
 0x294   :  { %451 = vrot.lane.b32.xlu1 %v436_v62, %s1406_s27  ;;  %448 = vrot.lane.b32.xlu0 %v429_v61, %s1406_s27 }
 0x302   :  { %v455_v63 = vpop.permute.xlu1 %454  ;;  %v446_v2 = vpop.permute.xlu0 %445 }
 0x303   :  { %v456_v8 = vsel %vm444_vm5, %v455_v63, 1.0  ;;  %v447_v9 = vsel %vm444_vm5, %v446_v2, 0.0 }
 0x304   :  { %v457_v10 = vmul.f32 %v456_v8, %v422_v55  ;;  %v478_v11 = vmul.f32 %v456_v8, %v443_v58  ;;  %v458_v12 = vmul.f32 %v447_v9, %v443_v58  ;;  %v479_v13 = vmul.f32 %v447_v9, %v422_v55 }
 0x305   :  { %v464_v18 = vmul.f32 %v456_v8, %v429_v61  ;;  %v471_v19 = vmul.f32 %v456_v8, %v436_v62  ;;  %v465_v40 = vmul.f32 %v447_v9, %v436_v62  ;;  %v472_v20 = vmul.f32 %v447_v9, %v429_v61 }
 0x306   :  { %v452_v14 = vpop.permute.xlu1 %451  ;;  %v449_v15 = vpop.permute.xlu0 %448  ;;  %v459_v22 = vadd.f32 %v458_v12, %v457_v10  ;;  %v480_v23 = vsub.f32 %v478_v11, %v479_v13 }
 0x307   :  { %v450_v21 = vsel %vm444_vm5, %v449_v15, 0.0  ;;  %v453_v25 = vsel %vm444_vm5, %v452_v14, 0.0  ;;  %v466_v31 = vsub.f32 %v464_v18, %v465_v40  ;;  %v473_v32 = vadd.f32 %v472_v20, %v471_v19 }
 0x308   :  { %v460_v26 = vmul.f32 %v450_v21, %v436_v62  ;;  %v467_v27 = vmul.f32 %v450_v21, %v443_v58  ;;  %v474_v28 = vmul.f32 %v450_v21, %v422_v55  ;;  %v481_v30 = vmul.f32 %v450_v21, %v429_v61 }
 0x309   :  { %v462_v33 = vmul.f32 %v453_v25, %v429_v61  ;;  %v483_v29 = vmul.f32 %v453_v25, %v436_v62  ;;  %v469_v42 = vmul.f32 %v453_v25, %v422_v55  ;;  %v476_v43 = vmul.f32 %v453_v25, %v443_v58 }
 0x30a   :  { %v461_v36 = vadd.f32 %v460_v26, %v459_v22  ;;  %v482_v37 = vsub.f32 %v480_v23, %v481_v30  ;;  %v468_v35 = vadd.f32 %v467_v27, %v466_v31  ;;  %v475_v39 = vsub.f32 %v473_v32, %v474_v28 }
 0x30b   :  { %v1409_v22 = vmov 3  }
 0x30c   :  { %v463_v38 = vsub.f32 %v461_v36, %v462_v33  ;;  %v484_v41 = vsub.f32 %v482_v37, %v483_v29  ;;  %v470_v17 = vadd.f32 %v469_v42, %v468_v35  ;;  %v477_v34 = vadd.f32 %v476_v43, %v475_v39  ;;  %1291 = vset.pattern.permute.xlu1 %v1409_v22 }
 0x30e   :  { %495 = vrot.lane.b32.xlu1 %v484_v41, %s1407_s28  ;;  %486 = vrot.lane.b32.xlu0 %v463_v38, %s1407_s28 }
 0x312   :  { %492 = vrot.lane.b32.xlu1 %v477_v34, %s1407_s28  ;;  %489 = vrot.lane.b32.xlu0 %v470_v17, %s1407_s28 }
 0x380   :  { %v496_v24 = vpop.permute.xlu1 %495  ;;  %v487_v44 = vpop.permute.xlu0 %486 }
 0x381   :  { %v497_v45 = vsel %vm485_vm6, %v496_v24, 1.0  ;;  %v488_v46 = vsel %vm485_vm6, %v487_v44, 0.0 }
 0x382   :  { %v498_v4 = vmul.f32 %v497_v45, %v463_v38  ;;  %v519_v47 = vmul.f32 %v497_v45, %v484_v41  ;;  %v499_v48 = vmul.f32 %v488_v46, %v484_v41  ;;  %v520_v49 = vmul.f32 %v488_v46, %v463_v38 }
 0x383   :  { %v505_v52 = vmul.f32 %v497_v45, %v470_v17  ;;  %v512_v53 = vmul.f32 %v497_v45, %v477_v34  ;;  %v506_v54 = vmul.f32 %v488_v46, %v477_v34  ;;  %v513_v55 = vmul.f32 %v488_v46, %v470_v17 }
 0x384   :  { %v493_v50 = vpop.permute.xlu1 %492  ;;  %v490_v51 = vpop.permute.xlu0 %489  ;;  %v500_v57 = vadd.f32 %v499_v48, %v498_v4  ;;  %v521_v58 = vsub.f32 %v519_v47, %v520_v49 }
 0x385   :  { %v491_v56 = vsel %vm485_vm6, %v490_v51, 0.0  ;;  %v494_v59 = vsel %vm485_vm6, %v493_v50, 0.0  ;;  %v507_v2 = vsub.f32 %v505_v52, %v506_v54  ;;  %v514_v8 = vadd.f32 %v513_v55, %v512_v53 }
 0x386   :  { %v501_v60 = vmul.f32 %v491_v56, %v477_v34  ;;  %v508_v61 = vmul.f32 %v491_v56, %v484_v41  ;;  %v515_v62 = vmul.f32 %v491_v56, %v463_v38  ;;  %v522_v63 = vmul.f32 %v491_v56, %v470_v17 }
 0x387   :  { %v503_v9 = vmul.f32 %v494_v59, %v470_v17  ;;  %v524_v10 = vmul.f32 %v494_v59, %v477_v34  ;;  %v510_v19 = vmul.f32 %v494_v59, %v463_v38  ;;  %v517_v40 = vmul.f32 %v494_v59, %v484_v41  ;;  %v1641_v59 = vld [vmem:[%s1817_s3] sm:$0x1]  ;;  %s1411_s3 = smov 64  }
 0x388   :  { %v502_v11 = vadd.f32 %v501_v60, %v500_v57  ;;  %v523_v12 = vsub.f32 %v521_v58, %v522_v63  ;;  %v509_v14 = vadd.f32 %v508_v61, %v507_v2  ;;  %v516_v15 = vsub.f32 %v514_v8, %v515_v62  ;;  %v862_v58 = vld [vmem:[%s1820_s6] sm:$0xf]  ;;  %s1413_s6 = smov 125  }
 0x38a   :  { %v504_v13 = vsub.f32 %v502_v11, %v503_v9  ;;  %v525_v18 = vsub.f32 %v523_v12, %v524_v10  ;;  %v511_v20 = vadd.f32 %v510_v19, %v509_v14  ;;  %v518_v21 = vadd.f32 %v517_v40, %v516_v15 }
 0x38c   :  { %536 = vrot.lane.b32.xlu1 %v525_v18, %s1408_s29  ;;  %527 = vrot.lane.b32.xlu0 %v504_v13, %s1408_s29 }
 0x390   :  { %533 = vrot.lane.b32.xlu1 %v518_v21, %s1408_s29  ;;  %530 = vrot.lane.b32.xlu0 %v511_v20, %s1408_s29 }
 0x3fe   :  { %v537_v23 = vpop.permute.xlu1 %536  ;;  %v528_v25 = vpop.permute.xlu0 %527 }
 0x3ff   :  { %v538_v26 = vsel %vm526_vm7, %v537_v23, 1.0  ;;  %v529_v27 = vsel %vm526_vm7, %v528_v25, 0.0 }
 0x400   :  { %v539_v28 = vmul.f32 %v538_v26, %v504_v13  ;;  %v560_v30 = vmul.f32 %v538_v26, %v525_v18  ;;  %v540_v31 = vmul.f32 %v529_v27, %v525_v18  ;;  %v561_v32 = vmul.f32 %v529_v27, %v504_v13 }
 0x401   :  { %v546_v36 = vmul.f32 %v538_v26, %v511_v20  ;;  %v553_v37 = vmul.f32 %v538_v26, %v518_v21  ;;  %v547_v38 = vmul.f32 %v529_v27, %v518_v21  ;;  %v554_v35 = vmul.f32 %v529_v27, %v511_v20 }
 0x402   :  { %v534_v33 = vpop.permute.xlu1 %533  ;;  %v531_v29 = vpop.permute.xlu0 %530  ;;  %v541_v41 = vadd.f32 %v540_v31, %v539_v28  ;;  %v562_v42 = vsub.f32 %v560_v30, %v561_v32 }
 0x403   :  { %v532_v39 = vsel %vm526_vm7, %v531_v29, 0.0  ;;  %v535_v43 = vsel %vm526_vm7, %v534_v33, 0.0  ;;  %v548_v45 = vsub.f32 %v546_v36, %v547_v38  ;;  %v555_v46 = vadd.f32 %v554_v35, %v553_v37 }
 0x404   :  { %v542_v17 = vmul.f32 %v532_v39, %v518_v21  ;;  %v549_v34 = vmul.f32 %v532_v39, %v525_v18  ;;  %v556_v24 = vmul.f32 %v532_v39, %v504_v13  ;;  %v563_v44 = vmul.f32 %v532_v39, %v511_v20 }
 0x405   :  { %v544_v4 = vmul.f32 %v535_v43, %v511_v20  ;;  %v565_v47 = vmul.f32 %v535_v43, %v518_v21  ;;  %v551_v54 = vmul.f32 %v535_v43, %v504_v13  ;;  %v558_v55 = vmul.f32 %v535_v43, %v525_v18  ;;  %v52_v43 = vld [vmem:[#allocation5] sm:$0x1] }
 0x406   :  { %v543_v48 = vadd.f32 %v542_v17, %v541_v41  ;;  %v564_v49 = vsub.f32 %v562_v42, %v563_v44  ;;  %v550_v51 = vadd.f32 %v549_v34, %v548_v45  ;;  %v557_v52 = vsub.f32 %v555_v46, %v556_v24 }
 0x407   :  { %v868_v17 = vadd.s32 1, %v862_v58  ;;  %v877_v24 = vrot.slane %v1502_v7, %v1500_v6  ;;  %v1412_v44 = vmov 0.0  }
 0x408   :  { %v545_v50 = vsub.f32 %v543_v48, %v544_v4  ;;  %v566_v53 = vsub.f32 %v564_v49, %v565_v47  ;;  %v552_v56 = vadd.f32 %v551_v54, %v550_v51  ;;  %v559_v57 = vadd.f32 %v558_v55, %v557_v52 }
 0x40a   :  { %577 = vrot.lane.b32.xlu1 %v566_v53, %s1410_s30  ;;  %568 = vrot.lane.b32.xlu0 %v545_v50, %s1410_s30 }
 0x40e   :  { %574 = vrot.lane.b32.xlu1 %v559_v57, %s1410_s30  ;;  %571 = vrot.lane.b32.xlu0 %v552_v56, %s1410_s30 }
 0x412   :  { %864 = vperm.xlu0 %1289, %v862_v58   ;;  %651 = vperm.xlu1 %1291, %v1641_v59  }
 0x416   :  { %660 = vperm.xlu0 %1289, %v1641_v59   ;;  %1293 = vset.pattern.permute.xlu1 %v1396_v1 }
 0x41a   :  { %1292 = vset.pattern.permute.xlu0 %v1395_v0 }
 0x47c   :  { %v578_v60 = vpop.permute.xlu1 %577  ;;  %v569_v61 = vpop.permute.xlu0 %568 }
 0x47d   :  { %v579_v62 = vsel %vm567_vm8, %v578_v60, 1.0  ;;  %v570_v63 = vsel %vm567_vm8, %v569_v61, 0.0 }
 0x47e   :  { %v580_v2 = vmul.f32 %v579_v62, %v545_v50  ;;  %v581_v8 = vmul.f32 %v570_v63, %v566_v53  ;;  %v601_v9 = vmul.f32 %v579_v62, %v566_v53  ;;  %v602_v10 = vmul.f32 %v570_v63, %v545_v50 }
 0x47f   :  { %v587_v13 = vmul.f32 %v579_v62, %v552_v56  ;;  %v588_v14 = vmul.f32 %v570_v63, %v559_v57  ;;  %v594_v23 = vmul.f32 %v579_v62, %v559_v57  ;;  %v595_v26 = vmul.f32 %v570_v63, %v552_v56 }
 0x480   :  { %v575_v11 = vpop.permute.xlu1 %574  ;;  %v572_v12 = vpop.permute.xlu0 %571  ;;  %v582_v18 = vadd.f32 %v581_v8, %v580_v2  ;;  %v603_v40 = vsub.f32 %v601_v9, %v602_v10 }
 0x481   :  { %v573_v15 = vsel %vm567_vm8, %v572_v12, 0.0  ;;  %v576_v19 = vsel %vm567_vm8, %v575_v11, 0.0  ;;  %v589_v25 = vsub.f32 %v587_v13, %v588_v14  ;;  %v596_v37 = vadd.f32 %v595_v26, %v594_v23 }
 0x482   :  { %v583_v20 = vmul.f32 %v573_v15, %v559_v57  ;;  %v590_v21 = vmul.f32 %v573_v15, %v566_v53  ;;  %v604_v22 = vmul.f32 %v573_v15, %v552_v56  ;;  %v585_v27 = vmul.f32 %v576_v19, %v552_v56 }
 0x483   :  { %v606_v28 = vmul.f32 %v576_v19, %v559_v57  ;;  %v597_v29 = vmul.f32 %v573_v15, %v545_v50  ;;  %v592_v38 = vmul.f32 %v576_v19, %v545_v50  ;;  %v599_v41 = vmul.f32 %v576_v19, %v566_v53 }
 0x484   :  { %v584_v30 = vadd.f32 %v583_v20, %v582_v18  ;;  %v605_v31 = vsub.f32 %v603_v40, %v604_v22  ;;  %v591_v33 = vadd.f32 %v590_v21, %v589_v25 }
 0x485   :  { %v598_v39 = vsub.f32 %v596_v37, %v597_v29 }
 0x486   :  { %v1648_v32 = vsub.f32 %v584_v30, %v585_v27  ;;  %v1650_v36 = vsub.f32 %v605_v31, %v606_v28  ;;  %v593_v35 = vadd.f32 %v592_v38, %v591_v33 }
 0x487   :  { %v600_v42 = vadd.f32 %v599_v41, %v598_v39 }
 0x488   :  { %618 = vrot.lane.b32.xlu0 %v1650_v36, %s1411_s3  ;;  %609 = vrot.lane.b32.xlu1 %v1648_v32, %s1411_s3 }
 0x48c   :  { %670 = vperm.xlu0 %1292, %v1641_v59   ;;  %612 = vrot.lane.b32.xlu1 %v593_v35, %s1411_s3 }
 0x490   :  { %1294 = vset.pattern.permute.xlu0 %v1397_v3  ;;  %615 = vrot.lane.b32.xlu1 %v600_v42, %s1411_s3 }
 0x491   :  { %724 = vperm.xlu0 %1294, %v52_v43   ;;  %v865_v34 = vpop.permute.xlu0 %864  ;;  %v652_v46 = vpop.permute.xlu1 %651 }
 0x492   :  { %vm866_vm9 = vcmp.le.s32.totalorder %v1568_v16, %v865_v34  ;;  %v657_v30 = vrot.slane %v652_v46, %v1500_v6 }
 0x493   :  { %v1664_v45 = vsel %vm866_vm9, 1.0, %v1412_v44 }
 0x494   :  { %680 = vperm.xlu1 %1293, %v1641_v59  }
 0x495   :  { %v661_v4 = vpop.permute.xlu0 %660 }
 0x496   :  { %v666_v28 = vrot.slane %v661_v4, %v1500_v6 }
 0x498   :  { %1295 = vset.pattern.permute.xlu1 %v1395_v0  ;;  %v878_v0 = vmul.f32 %v877_v24, %v1664_v45 }
 0x499   :  { %733 = vperm.xlu1 %1295, %v52_v43  }
 0x49d   :  { %1296 = vset.pattern.permute.xlu1 %v1396_v1  ;;  %v879_v1 = vsel %vm853_vm10, %v878_v0, 0.0 }
 0x49e   :  { %742 = vperm.xlu1 %1296, %v52_v43  }
 0x4a2   :  { %1297 = vset.pattern.permute.xlu1 %v1397_v3 }
 0x4a3   :  { %870 = vperm.xlu1 %1297, %v868_v17  }
 0x4b0   :  { %880 = vadd.xlane.f32.xlu0 %v879_v1 }
 0x4fa   :  { %v610_v47 = vpop.permute.xlu1 %609  ;;  %v619_v3 = vpop.permute.xlu0 %618 }
 0x4fb   :  { %v620_v7 = vsel %vm608_vm11, %v619_v3, 1.0  ;;  %v611_v49 = vsel %vm608_vm11, %v610_v47, 0.0 }
 0x4fc   :  { %v621_v51 = vmul.f32 %v620_v7, %v1648_v32  ;;  %v642_v52 = vmul.f32 %v620_v7, %v1650_v36  ;;  %v622_v53 = vmul.f32 %v611_v49, %v1650_v36  ;;  %v643_v54 = vmul.f32 %v611_v49, %v1648_v32 }
 0x4fd   :  { %v628_v56 = vmul.f32 %v620_v7, %v593_v35  ;;  %v635_v57 = vmul.f32 %v620_v7, %v600_v42  ;;  %v629_v58 = vmul.f32 %v611_v49, %v600_v42  ;;  %v636_v60 = vmul.f32 %v611_v49, %v593_v35 }
 0x4fe   :  { %v613_v48 = vpop.permute.xlu1 %612  ;;  %v623_v9 = vadd.f32 %v622_v53, %v621_v51  ;;  %v644_v10 = vsub.f32 %v642_v52, %v643_v54 }
 0x4ff   :  { %v614_v50 = vsel %vm608_vm11, %v613_v48, 0.0  ;;  %v630_v13 = vsub.f32 %v628_v56, %v629_v58  ;;  %v637_v14 = vadd.f32 %v636_v60, %v635_v57 }
 0x500   :  { %v624_v61 = vmul.f32 %v614_v50, %v600_v42  ;;  %v645_v62 = vmul.f32 %v614_v50, %v593_v35  ;;  %v631_v2 = vmul.f32 %v614_v50, %v1650_v36  ;;  %v638_v8 = vmul.f32 %v614_v50, %v1648_v32 }
 0x502   :  { %v616_v55 = vpop.permute.xlu1 %615  ;;  %v625_v19 = vadd.f32 %v624_v61, %v623_v9  ;;  %v646_v40 = vsub.f32 %v644_v10, %v645_v62  ;;  %v632_v20 = vadd.f32 %v631_v2, %v630_v13  ;;  %v639_v21 = vsub.f32 %v637_v14, %v638_v8  ;;  %v1692_v14 = vld [vmem:[#allocation2] sm:$0xff] }
 0x503   :  { %v617_v63 = vsel %vm608_vm11, %v616_v55, 0.0 }
 0x504   :  { %v626_v11 = vmul.f32 %v617_v63, %v593_v35  ;;  %v647_v12 = vmul.f32 %v617_v63, %v600_v42  ;;  %v633_v15 = vmul.f32 %v617_v63, %v1648_v32  ;;  %v640_v18 = vmul.f32 %v617_v63, %v1650_v36 }
 0x506   :  { %v627_v22 = vsub.f32 %v625_v19, %v626_v11  ;;  %v648_v23 = vsub.f32 %v646_v40, %v647_v12  ;;  %v634_v25 = vadd.f32 %v633_v15, %v632_v20  ;;  %v641_v26 = vadd.f32 %v640_v18, %v639_v21 }
 0x508   :  { %v658_v33 = vmul.f32 %v657_v30, %v627_v22  ;;  %v667_v29 = vmul.f32 %v666_v28, %v648_v23  ;;  %v689_v32 = vmul.f32 %v657_v30, %v634_v25  ;;  %v690_v37 = vmul.f32 %v666_v28, %v641_v26 }
 0x509   :  { %v696_v36 = vmul.f32 %v657_v30, %v641_v26  ;;  %v697_v38 = vmul.f32 %v666_v28, %v634_v25  ;;  %v703_v35 = vmul.f32 %v657_v30, %v648_v23  ;;  %v704_v43 = vmul.f32 %v666_v28, %v627_v22 }
 0x50a   :  { %v668_v17 = vadd.f32 %v667_v29, %v658_v33  ;;  %v691_v34 = vsub.f32 %v689_v32, %v690_v37 }
 0x50b   :  { %v671_v27 = vpop.permute.xlu0 %670  ;;  %v698_v24 = vadd.f32 %v697_v38, %v696_v36  ;;  %v705_v48 = vsub.f32 %v703_v35, %v704_v43 }
 0x50c   :  { %v676_v31 = vrot.slane %v671_v27, %v1500_v6 }
 0x50e   :  { %v677_v39 = vmul.f32 %v676_v31, %v641_v26  ;;  %v692_v41 = vmul.f32 %v676_v31, %v648_v23  ;;  %v699_v42 = vmul.f32 %v676_v31, %v627_v22  ;;  %v706_v1 = vmul.f32 %v676_v31, %v634_v25 }
 0x510   :  { %v678_v4 = vadd.f32 %v677_v39, %v668_v17  ;;  %v693_v47 = vadd.f32 %v692_v41, %v691_v34  ;;  %v700_v3 = vsub.f32 %v698_v24, %v699_v42  ;;  %v707_v52 = vsub.f32 %v705_v48, %v706_v1  ;;  %v725_v9 = vpop.permute.xlu0 %724 }
 0x511   :  { %v730_v11 = vrot.slane %v725_v9, %v1500_v6  ;;  %v884_v42 = vsub.s32 7, %v1497_v5  ;;  %v808_v24 = vrot.slane %v1692_v14, 7  ;;  %v811_v48 = vrot.slane %v1692_v14, 6 }
 0x513   :  { %v681_v0 = vpop.permute.xlu1 %680  ;;  %v731_v15 = vsub.f32 %v1692_v14, %v730_v11 }
 0x514   :  { %v686_v46 = vrot.slane %v681_v0, %v1500_v6 }
 0x515   :  { %v761_v20 = vrot.slane %v731_v15, 1 }
 0x516   :  { %v687_v7 = vmul.f32 %v686_v46, %v634_v25  ;;  %v694_v49 = vmul.f32 %v686_v46, %v627_v22  ;;  %v701_v50 = vmul.f32 %v686_v46, %v648_v23  ;;  %v708_v51 = vmul.f32 %v686_v46, %v641_v26 }
 0x518   :  { %v688_v53 = vsub.f32 %v678_v4, %v687_v7  ;;  %v695_v54 = vadd.f32 %v694_v49, %v693_v47  ;;  %v702_v55 = vadd.f32 %v701_v50, %v700_v3  ;;  %v709_v56 = vsub.f32 %v707_v52, %v708_v51  ;;  %v734_v60 = vpop.permute.xlu1 %733 }
 0x519   :  { %v739_v13 = vrot.slane %v734_v60, %v1500_v6 }
 0x51a   :  { %v710_v57 = vmul.f32 %v688_v53, %v688_v53  ;;  %v711_v58 = vmul.f32 %v695_v54, %v695_v54  ;;  %v713_v62 = vmul.f32 %v702_v55, %v702_v55  ;;  %v715_v2 = vmul.f32 %v709_v56, %v709_v56 }
 0x51b   :  { %v740_v19 = vsub.f32 %v1692_v14, %v739_v13 }
 0x51c   :  { %v712_v61 = vadd.f32 %v711_v58, %v710_v57 }
 0x51d   :  { %v743_v10 = vpop.permute.xlu1 %742  ;;  %v755_v26 = vrot.slane %v740_v19, 2 }
 0x51e   :  { %v714_v63 = vadd.f32 %v713_v62, %v712_v61  ;;  %v748_v12 = vrot.slane %v743_v10, %v1500_v6 }
 0x520   :  { %v716_v8 = vadd.f32 %v715_v2, %v714_v63  ;;  %v749_v18 = vsub.f32 %v1692_v14, %v748_v12  ;;  %v814_v2 = vrot.slane %v1692_v14, 5 }
 0x522   :  { %1306 = vrsqrt.f32 %v716_v8  ;;  %v751_v21 = vrot.slane %v749_v18, 3 }
 0x52c   :  { %v1307_v40 = vpop.eup %1306 }
 0x52d   :  { %v1697_v22 = vmul.f32 %v1307_v40, %v688_v53  ;;  %v1699_v23 = vmul.f32 %v1307_v40, %v695_v54  ;;  %v1701_v25 = vmul.f32 %v1307_v40, %v702_v55  ;;  %v1709_v38 = vmul.f32 %v1307_v40, %v709_v56 }
 0x52e   :  { %v885_v54 = vrot.slane %v1692_v14, %v884_v42  ;;  %v1726_v55 = vrot.slane %v1641_v59, %v1500_v6 }
 0x52f   :  { %v763_v27 = vmul.f32 %v761_v20, %v1701_v25  ;;  %v768_v28 = vmul.f32 %v761_v20, %v1699_v23  ;;  %v757_v30 = vmul.f32 %v755_v26, %v1701_v25  ;;  %v767_v31 = vmul.f32 %v755_v26, %v1697_v22 }
 0x530   :  { %v753_v33 = vmul.f32 %v751_v21, %v1699_v23  ;;  %v764_v29 = vmul.f32 %v751_v21, %v1697_v22 }
 0x531   :  { %v769_v32 = vsub.f32 %v767_v31, %v768_v28 }
 0x532   :  { %v758_v37 = vsub.f32 %v753_v33, %v757_v30  ;;  %v765_v36 = vsub.f32 %v763_v27, %v764_v29 }
 0x533   :  { %v770_v35 = vmul.f32 2.0, %v769_v32  ;;  %v845_v32 = vrot.slane %v1709_v38, 7 }
 0x534   :  { %v759_v39 = vmul.f32 2.0, %v758_v37  ;;  %v766_v41 = vmul.f32 2.0, %v765_v36  ;;  %v839_v36 = vrot.slane %v1697_v22, 2 }
 0x535   :  { %v776_v43 = vmul.f32 %v770_v35, %v1699_v23  ;;  %v789_v17 = vmul.f32 %v770_v35, %v1697_v22  ;;  %v795_v34 = vmul.f32 %v770_v35, %v1709_v38 }
 0x536   :  { %v771_v0 = vmul.f32 %v759_v39, %v1709_v38  ;;  %v777_v1 = vmul.f32 %v766_v41, %v1701_v25  ;;  %v783_v46 = vmul.f32 %v766_v41, %v1709_v38  ;;  %v788_v4 = vmul.f32 %v759_v39, %v1701_v25 }
 0x537   :  { %v797_v47 = vrot.slane %v795_v34, 5  ;;  %v800_v3 = vmul.f32 %v766_v41, %v1697_v22  ;;  %v801_v5 = vmul.f32 %v759_v39, %v1699_v23  ;;  %v842_v39 = vrot.slane %v1699_v23, 1  ;;  %v871_v34 = vpop.permute.xlu1 %870 }
 0x538   :  { %v773_v7 = vrot.slane %v771_v0, 7  ;;  %v778_v49 = vsub.f32 %v776_v43, %v777_v1  ;;  %v785_v50 = vrot.slane %v783_v46, 6  ;;  %v790_v51 = vsub.f32 %v788_v4, %v789_v17  ;;  %v1750_v1 = vld [vmem:[%s1818_s4] sm:$0xf] }
 0x539   :  { %v799_v52 = vadd.f32 %v797_v47, %v749_v18  ;;  %v802_v53 = vsub.f32 %v800_v3, %v801_v5  ;;  %vm872_vm2 = vcmp.eq.s32.totalorder %v1568_v16, %v871_v34  ;;  %v1414_v38 = vmov 1.0  }
 0x53a   :  { %v775_v56 = vadd.f32 %v773_v7, %v731_v15  ;;  %v780_v57 = vrot.slane %v778_v49, 7  ;;  %v787_v58 = vadd.f32 %v785_v50, %v740_v19  ;;  %v792_v60 = vrot.slane %v790_v51, 6 }
 0x53b   :  { %v804_v61 = vrot.slane %v802_v53, 5  ;;  %v991_v4 = vsub.f32 0.0, %v1750_v1 }
 0x53c   :  { %v782_v62 = vadd.f32 %v780_v57, %v775_v56  ;;  %v794_v63 = vadd.f32 %v792_v60, %v787_v58 }
 0x53d   :  { %v806_v8 = vadd.f32 %v804_v61, %v799_v52  ;;  %v881_v9 = vpop.xlane.xlu0 %880 }
 0x53e   :  { %v886_v10 = vsub.f32 %v881_v9, %v885_v54  ;;  %v972_v11 = vmul.f32 %v1726_v55, %v881_v9  ;;  %v810_v12 = vmul.f32 %v808_v24, %v782_v62  ;;  %v813_v13 = vmul.f32 %v811_v48, %v794_v63  ;;  %v1173_v63 = vld [vmem:[%s1819_s5] sm:$0xf]  ;;  %s1425_s5 = smov [#allocation7]  }
 0x53f   :  { %v1234_v18 = vadd.f32 -9.81007, %v806_v8  ;;  %s1216_s0 = sshll.u32 %s1425_s5, 4  ;;  %s1217_s0 = int_to_ptr.vmem [resolvable:$true] %s1216_s0 }
 0x540   :  { %v887_v6 = vmul.f32 %v886_v10, %v1664_v45  ;;  %974 = vrot.lane.b32.xlu1 %v972_v11, %s1413_s6  ;;  %v817_v59 = vmul.f32 %v810_v12, %v808_v24  ;;  %v821_v15 = vrot.slane %v810_v12, 1  ;;  %v818_v40 = vmul.f32 %v813_v13, %v811_v48  ;;  %s1365_s24 = scalar_lea.vmem %s1217_s0, 16  ;;  %s1369_s25 = scalar_lea.vmem %s1217_s0, 32 }
 0x541   :  { %v816_v19 = vmul.f32 %v1234_v18, %v814_v2  ;;  %v824_v20 = vrot.slane %v813_v13, 1  ;;  %p1366_p2 = scmp.ne.s32.totalorder %s1217_s0, %s1365_s24  ;;  %p1370_p3 = scmp.lt.s32.totalorder %s1217_s0, %s1217_s0 }
 0x542   :  { %v889_v21 = vrot.slane %v887_v6, 4  ;;  %v830_v14 = vrot.slane %v817_v59, 6  ;;  %v833_v31 = vrot.slane %v818_v40, 6  ;;  %p1371_p4 = scmp.lt.s32.totalorder %s1369_s25, %s1365_s24 }
 0x543   :  { %v819_v26 = vmul.f32 %v816_v19, %v814_v2  ;;  %v827_v27 = vrot.slane %v816_v19, 1  ;;  %v848_v28 = vsel %vm847_vm12, %v821_v15, %v824_v20 }
 0x544   :  { %v891_v30 = vsel %vm853_vm10, %v1664_v45, %v889_v21  ;;  %v861_v45 = vsel %vm847_vm12, %v1701_v25, %v845_v32  ;;  %p1372_p5 = por %p1371_p4, %p1370_p3 }
 0x545   :  { %1244 = vmatprep.mubr.f32.mxu0 %v891_v30  ;;  %v836_v33 = vrot.slane %v819_v26, 6  ;;  %v850_v29 = vsel %vm849_vm13, %v848_v28, %v827_v27 }
 0x546   :  { %v852_v37 = vsel %vm851_vm14, %v850_v29, %v830_v14  ;;  %p1373_p6 = pnand %p1372_p5, %p1366_p2 }
 0x547   :  { %v854_v35 = vsel %vm853_vm10, %v852_v37, %v833_v31 }
 0x548   :  { %v856_v41 = vsel %vm855_vm15, %v854_v35, %v836_v33 }
 0x549   :  { %v858_v42 = vsel %vm857_vm0, %v856_v41, %v839_v36 }
 0x54a   :  { %v860_v43 = vsel %vm859_vm1, %v858_v42, %v842_v39  ;;  %vm1189_vm1 = vcmask 3072  }
 0x54b   :  { %v1247_v17 = vpack.c.bf16 %v861_v45, %v860_v43 }
 0x54d   :  { %1248 = vmatprep.subr.bf16.mxu0 %v1247_v17 }
 0x54e   :  { %1250 = vmatpush3.bf16.xpose.msra.mxu0 %v1247_v17 }
 0x555   :  { %1245 = vmatmul.mubr.msk.f32.vlgmr.msra.gmra.mrb[0].mxu0 %vm872_vm2, %v1414_v38  ;;  %vm1158_vm2 = vcmask 27672  }
 0x5b2   :  { %v975_v16 = vpop.permute.xlu1 %974 }
 0x5b3   :  { %v977_v48 = vadd.f32 %v975_v16, %v1726_v55 }
 0x628   :  { %v1246_v22 = vpop.f32.mrb[0].mxu0 }
 0x629   :  { %1024 = vrot.lane.b32.xlu0 %v1246_v22, %s1415_s12  ;;  %v958_v23 = vpop.f32.mrb[1].mxu0 }
 0x62a   :  { %v979_v24 = vrot.slane %v958_v23, 4  ;;  %v984_v0 = vmul.f32 0.5, %v958_v23 }
 0x62c   :  { %980 = vrot.lane.b32.xlu1 %v979_v24, %s1406_s27 }
 0x630   :  { %986 = vrot.lane.b32.xlu1 %v984_v0, %s1404_s1 }
 0x634   :  { %997 = vrot.lane.b32.xlu1 %v1246_v22, %s1416_s13 }
 0x638   :  { %1028 = vrot.lane.b32.xlu1 %v1246_v22, %s1417_s14 }
 0x63c   :  { %1006 = vrot.lane.b32.xlu1 %v1246_v22, %s1418_s15 }
 0x640   :  { %1015 = vrot.lane.b32.xlu1 %v1246_v22, %s1419_s16 }
 0x644   :  { %1060 = vrot.lane.b32.xlu1 %v1246_v22, %s1420_s17 }
 0x648   :  { %993 = vrot.lane.b32.xlu1 %v1246_v22, %s1413_s6 }
 0x69b   :  { %v1025_v56 = vpop.permute.xlu0 %1024 }
 0x69c   :  { %v1041_v55 = vmul.f32 %v1025_v56, %v991_v4  ;;  %v1027_v18 = vmul.f32 %v1025_v56, %v1750_v1 }
 0x69e   :  { %v981_v25 = vpop.permute.xlu1 %980 }
 0x69f   :  { %v983_v49 = vadd.f32 %v981_v25, %v977_v48 }
 0x6a2   :  { %v987_v46 = vpop.permute.xlu1 %986 }
 0x6a3   :  { %v989_v51 = vadd.f32 %v987_v46, %v983_v49 }
 0x6a6   :  { %v998_v47 = vpop.permute.xlu1 %997 }
 0x6a7   :  { %v1000_v3 = vmul.f32 %v998_v47, %v991_v4 }
 0x6a9   :  { %1002 = vrot.lane.b32.xlu1 %v1000_v3, %s1421_s20 }
 0x6aa   :  { %v1029_v5 = vpop.permute.xlu1 %1028 }
 0x6ab   :  { %v1031_v7 = vmul.f32 %v1029_v5, %v991_v4 }
 0x6ad   :  { %1037 = vrot.lane.b32.xlu0 %v1031_v7, %s1405_s2  ;;  %1033 = vrot.lane.b32.xlu1 %v1031_v7, %s1421_s20 }
 0x6ae   :  { %v1007_v50 = vpop.permute.xlu1 %1006 }
 0x6af   :  { %v1009_v53 = vmul.f32 %v1007_v50, %v991_v4 }
 0x6b1   :  { %1175 = vrot.lane.b32.xlu1 %v989_v51, %s1415_s12 }
 0x6b2   :  { %v1016_v52 = vpop.permute.xlu1 %1015 }
 0x6b3   :  { %v1018_v54 = vmul.f32 %v1016_v52, %v991_v4  ;;  %v1047_v40 = vmul.f32 %v1016_v52, %v1750_v1 }
 0x6b5   :  { %1011 = vrot.lane.b32.xlu1 %v1009_v53, %s1405_s2  ;;  %1020 = vrot.lane.b32.xlu0 %v1018_v54, %s1404_s1 }
 0x6b6   :  { %v1061_v57 = vpop.permute.xlu1 %1060 }
 0x6b7   :  { %v1064_v58 = vmul.f32 %v1061_v57, %v991_v4  ;;  %v1063_v37 = vmul.f32 %v1061_v57, %v1750_v1 }
 0x6b9   :  { %1048 = vrot.lane.b32.xlu1 %v1009_v53, %s1421_s20  ;;  %1052 = vrot.lane.b32.xlu0 %v1018_v54, %s1405_s2 }
 0x6ba   :  { %v994_v60 = vpop.permute.xlu1 %993 }
 0x6bb   :  { %v996_v10 = vmul.f32 %v994_v60, %v1750_v1 }
 0x6bd   :  { %1043 = vrot.lane.b32.xlu1 %v1041_v55, %s1404_s1  ;;  %1066 = vrot.lane.b32.xlu0 %v1064_v58, %s1421_s20 }
 0x6c1   :  { %1056 = vrot.lane.b32.xlu1 %v1009_v53, %s1404_s1  ;;  %1074 = vrot.lane.b32.xlu0 %v1064_v58, %s1404_s1 }
 0x6c5   :  { %1070 = vrot.lane.b32.xlu1 %v1064_v58, %s1405_s2 }
 0x71b   :  { %v1003_v61 = vpop.permute.xlu1 %1002 }
 0x71c   :  { %v1005_v6 = vadd.f32 %v1003_v61, %v996_v10 }
 0x71f   :  { %v1034_v62 = vpop.permute.xlu1 %1033  ;;  %v1038_v2 = vpop.permute.xlu0 %1037 }
 0x720   :  { %v1036_v59 = vsub.f32 %v1027_v18, %v1034_v62 }
 0x722   :  { %v1040_v26 = vadd.f32 %v1038_v2, %v1036_v59 }
 0x723   :  { %v1176_v8 = vpop.permute.xlu1 %1175 }
 0x724   :  { %v1178_v9 = vsub.f32 %v1173_v63, %v1176_v8 }
 0x726   :  { %v1771_v11 = vmul.f32 %v1178_v9, %v1178_v9 }
 0x727   :  { %v1021_v12 = vpop.permute.xlu0 %1020  ;;  %v1012_v13 = vpop.permute.xlu1 %1011 }
 0x728   :  { %1185 = vrot.lane.b32.xlu0 %v1771_v11, %s1422_s22  ;;  %1181 = vrot.lane.b32.xlu1 %v1771_v11, %s1423_s23  ;;  %v1014_v15 = vadd.f32 %v1012_v13, %v1005_v6 }
 0x72a   :  { %v1023_v21 = vsub.f32 %v1014_v15, %v1021_v12 }
 0x72b   :  { %v1049_v19 = vpop.permute.xlu1 %1048  ;;  %v1053_v20 = vpop.permute.xlu0 %1052 }
 0x72c   :  { %v1051_v14 = vadd.f32 %v1049_v19, %v1047_v40  ;;  %v1078_v30 = vmul.f32 %v1023_v21, %v1023_v21 }
 0x72e   :  { %v1055_v33 = vsub.f32 %v1051_v14, %v1053_v20  ;;  %v1424_v14 = vmov 0.7853982  }
 0x72f   :  { %v1044_v27 = vpop.permute.xlu1 %1043  ;;  %v1067_v29 = vpop.permute.xlu0 %1066 }
 0x730   :  { %v1046_v28 = vadd.f32 %v1044_v27, %v1040_v26  ;;  %v1069_v39 = vsub.f32 %v1063_v37, %v1067_v29 }
 0x732   :  { %v1079_v31 = vmul.f32 %v1046_v28, %v1046_v28 }
 0x733   :  { %v1057_v32 = vpop.permute.xlu1 %1056  ;;  %v1075_v17 = vpop.permute.xlu0 %1074 }
 0x734   :  { %v1080_v36 = vadd.f32 %v1079_v31, %v1078_v30  ;;  %v1059_v35 = vadd.f32 %v1057_v32, %v1055_v33 }
 0x736   :  { %v1081_v41 = vmul.f32 %v1059_v35, %v1059_v35 }
 0x737   :  { %v1071_v42 = vpop.permute.xlu1 %1070 }
 0x738   :  { %v1778_v43 = vadd.f32 %v1081_v41, %v1080_v36  ;;  %v1073_v45 = vsub.f32 %v1069_v39, %v1071_v42 }
 0x73a   :  { %1308 = vrsqrt.f32 %v1778_v43  ;;  %v1077_v34 = vsub.f32 %v1073_v45, %v1075_v17  ;;  %vm1085_vm4 = vcmp.eq.f32.partialorder %v1778_v43, inf  ;;  %v1088_v16 = vand.u32 2147483648, %v1778_v43 }
 0x73b   :  { %vm1087_vm5 = vcmp.eq.f32.partialorder %v1778_v43, 0.0  ;;  %v1145_v31 = vmul.f32 2.0, %v1778_v43 }
 0x73c   :  { %vm1090_vm3 = vcmp.lt.f32.partialorder %v1077_v34, 0.0 }
 0x73d   :  { %v1091_v22 = vsel %vm1090_vm3, -1.0, %v1414_v38 }
 0x73e   :  { %v1092_v0 = vmul.f32 %v1091_v22, %v1077_v34 }
 0x740   :  { %v1093_v4 = vand.u32 2147483647, %v1092_v0  ;;  %v1141_v55 = vmax.f32 %v1092_v0, 1e-08  ;;  %vm1123_vm7 = vcmp.lt.s32.totalorder %v1092_v0, 0  ;;  %vm1120_vm10 = vcmp.lt.f32.partialorder %v1092_v0, 0.0 }
 0x741   :  { %v1124_v40 = vsel %vm1123_vm7, 3.1415927, %v1412_v44  ;;  %vm1127_vm12 = vcmp.ne.f32.partialorder %v1092_v0, %v1092_v0  ;;  %v1132_v26 = vsel %vm1120_vm10, 2.3561945, %v1424_v14 }
 0x742   :  { %v1146_v61 = vmul.f32 3.0, %v1141_v55  ;;  %vm1133_vm14 = vcmp.eq.s32.totalorder %v1093_v4, inf }
 0x744   :  { %v1309_v23 = vpop.eup %1308  ;;  %v1147_v2 = vmul.f32 %v1146_v61, %v1141_v55 }
 0x745   :  { %v1084_v24 = vmul.f32 %v1309_v23, %v1778_v43 }
 0x746   :  { %v1148_v10 = vmul.f32 %v1147_v2, %v1141_v55 }
 0x747   :  { %v1086_v25 = vsel %vm1085_vm4, %v1778_v43, %v1084_v24 }
 0x748   :  { %v1787_v1 = vsel %vm1087_vm5, %v1088_v16, %v1086_v25  ;;  %vm1208_vm5 = vcmask 0  }
 0x749   :  { %v1094_v46 = vand.u32 2147483647, %v1787_v1  ;;  %v1152_v18 = vmax.f32 %v1787_v1, 1e-08  ;;  %vm1128_vm8 = vcmp.ne.f32.partialorder %v1787_v1, %v1787_v1  ;;  %vm1125_vm11 = vcmp.eq.f32.partialorder %v1787_v1, 0.0 }
 0x74a   :  { %vm1129_vm13 = vmor %vm1127_vm12, %vm1128_vm8  ;;  %v1138_v30 = vand.u32 2147483648, %v1787_v1  ;;  %vm1142_vm0 = vcmp.lt.f32.partialorder %v1787_v1, 1e-06 }
 0x74b   :  { %v1096_v47 = vmax.f32 %v1093_v4, %v1094_v46  ;;  %v1095_v38 = vmin.f32 %v1093_v4, %v1094_v46  ;;  %vm1117_vm6 = vcmp.gt.f32.partialorder %v1094_v46, %v1093_v4  ;;  %vm1134_vm9 = vcmp.eq.s32.totalorder %v1094_v46, inf }
 0x74c   :  { %vm1135_vm15 = vmand %vm1133_vm14, %vm1134_vm9 }
 0x74d   :  { %1310 = vrcp.f32 %v1096_v47 }
 0x74e   :  { %1312 = vrcp.f32 %v1148_v10 }
 0x74f   :  { %1314 = vrcp.f32 %v1141_v55 }
 0x750   :  { %1316 = vrcp.f32 %v1152_v18 }
 0x757   :  { %v1311_v3 = vpop.eup %1310 }
 0x758   :  { %v1098_v5 = vmul.f32 %v1311_v3, %v1095_v38  ;;  %v1313_v27 = vpop.eup %1312 }
 0x759   :  { %v1315_v29 = vpop.eup %1314  ;;  %v1150_v37 = vmul.f32 %v1313_v27, %v1145_v31 }
 0x75a   :  { %v1099_v48 = vmul.f32 %v1098_v5, %v1098_v5  ;;  %v1144_v44 = vmul.f32 2.0, %v1315_v29  ;;  %v1317_v35 = vpop.eup %1316 }
 0x75c   :  { %v1100_v7 = vmul.f32 0.002785687, %v1099_v48  ;;  %v1151_v39 = vsub.f32 %v1144_v44, %v1150_v37 }
 0x75e   :  { %v1101_v49 = vadd.f32 -0.015866, %v1100_v7 }
 0x760   :  { %v1102_v50 = vmul.f32 %v1101_v49, %v1099_v48 }
 0x762   :  { %v1103_v51 = vadd.f32 0.04247222, %v1102_v50 }
 0x764   :  { %v1104_v52 = vmul.f32 %v1103_v51, %v1099_v48 }
 0x766   :  { %v1105_v53 = vadd.f32 -0.074975304, %v1104_v52 }
 0x768   :  { %v1106_v54 = vmul.f32 %v1105_v53, %v1099_v48 }
 0x76a   :  { %v1107_v56 = vadd.f32 0.1064488, %v1106_v54 }
 0x76c   :  { %v1108_v57 = vmul.f32 %v1107_v56, %v1099_v48 }
 0x76e   :  { %v1109_v58 = vadd.f32 -0.14207031, %v1108_v57 }
 0x770   :  { %v1110_v60 = vmul.f32 %v1109_v58, %v1099_v48 }
 0x772   :  { %v1111_v62 = vadd.f32 0.19993454, %v1110_v60 }
 0x774   :  { %v1112_v63 = vmul.f32 %v1111_v62, %v1099_v48 }
 0x776   :  { %v1113_v8 = vadd.f32 -0.33333147, %v1112_v63 }
 0x778   :  { %v1114_v9 = vmul.f32 %v1113_v8, %v1099_v48 }
 0x77a   :  { %v1115_v12 = vmul.f32 %v1114_v9, %v1098_v5 }
 0x77c   :  { %v1116_v13 = vadd.f32 %v1115_v12, %v1098_v5 }
 0x77e   :  { %v1118_v6 = vsub.f32 1.5707964, %v1116_v13 }
 0x780   :  { %v1119_v59 = vsel %vm1117_vm6, %v1118_v6, %v1116_v13 }
 0x781   :  { %v1121_v15 = vsub.f32 3.1415927, %v1119_v59 }
 0x783   :  { %v1122_v19 = vsel %vm1120_vm10, %v1121_v15, %v1119_v59 }
 0x784   :  { %v1126_v20 = vsel %vm1125_vm11, %v1124_v40, %v1122_v19 }
 0x785   :  { %v1130_v21 = vsel %vm1129_vm13, nan, %v1126_v20 }
 0x786   :  { %v1136_v28 = vsel %vm1135_vm15, %v1132_v26, %v1130_v21 }
 0x787   :  { %v1137_v33 = vand.u32 2147483647, %v1136_v28 }
 0x789   :  { %v1139_v32 = vor.u32 %v1138_v30, %v1137_v33 }
 0x78b   :  { %v1140_v36 = vmul.f32 2.0, %v1139_v32 }
 0x78d   :  { %v1154_v41 = vmul.f32 %v1317_v35, %v1140_v36 }
 0x78f   :  { %v1155_v42 = vsel %vm1142_vm0, %v1151_v39, %v1154_v41 }
 0x790   :  { %v1156_v38 = vmul.f32 %v1155_v42, %v1155_v42 }
 0x792   :  { %v1157_v1 = vmul.f32 %v1156_v38, %v1778_v43 }
 0x794   :  { %v1159_v3 = vsel %vm1158_vm2, %v1157_v1, 0.0 }
 0x795   :  { %v1160_v5 = vrot.slane %v1159_v3, 4 }
 0x79a   :  { %v1182_v45 = vpop.permute.xlu1 %1181  ;;  %v1186_v34 = vpop.permute.xlu0 %1185 }
 0x79b   :  { %v1184_v17 = vadd.f32 %v1182_v45, %v1771_v11  ;;  %v1161_v11 = vadd.f32 %v1160_v5, %v1159_v3 }
 0x79d   :  { %v1188_v22 = vadd.f32 %v1186_v34, %v1184_v17  ;;  %v1162_v48 = vrot.slane %v1161_v11, 2 }
 0x79f   :  { %v1190_v23 = vsel %vm1189_vm1, %v1188_v22, 0.0  ;;  %v1163_v7 = vadd.f32 %v1162_v48, %v1161_v11 }
 0x7a0   :  { %v1191_v24 = vrot.slane %v1190_v23, 4 }
 0x7a1   :  { %v1164_v49 = vrot.slane %v1163_v7, 1 }
 0x7a2   :  { %v1192_v0 = vadd.f32 %v1191_v24, %v1190_v23 }
 0x7a3   :  { %v1165_v50 = vadd.f32 %v1164_v49, %v1163_v7 }
 0x7a4   :  { %v1193_v16 = vrot.slane %v1192_v0, 2 }
 0x7a5   :  { %1318 = vrsqrt.f32 %v1165_v50  ;;  %vm1168_vm3 = vcmp.eq.f32.partialorder %v1165_v50, inf  ;;  %v1171_v54 = vand.u32 2147483648, %v1165_v50  ;;  %vm1170_vm4 = vcmp.eq.f32.partialorder %v1165_v50, 0.0 }
 0x7a6   :  { %v1194_v25 = vadd.f32 %v1193_v16, %v1192_v0 }
 0x7a8   :  { %v1195_v46 = vrot.slane %v1194_v25, 1 }
 0x7aa   :  { %v1196_v4 = vadd.f32 %v1195_v46, %v1194_v25 }
 0x7ac   :  { %v1198_v47 = vmul.f32 0.083333336, %v1196_v4 }
 0x7ae   :  { %1200 = vrot.lane.b32.xlu1 %v1198_v47, %s1421_s20 }
 0x7af   :  { %v1319_v51 = vpop.eup %1318 }
 0x7b0   :  { %v1167_v52 = vmul.f32 %v1319_v51, %v1165_v50 }
 0x7b2   :  { %v1169_v53 = vsel %vm1168_vm3, %v1165_v50, %v1167_v52 }
 0x7b3   :  { %v1172_v56 = vsel %vm1170_vm4, %v1171_v54, %v1169_v53 }
 0x820   :  { %v1201_v57 = vpop.permute.xlu1 %1200 }
 0x821   :  { %v1203_v55 = vadd.f32 %v1201_v57, %v1172_v56 }
 0x823   :  { %1205 = vrot.lane.b32.xlu0 %v1203_v55, %s1413_s6 }
 0x895   :  { %v1206_v43 = vpop.permute.xlu0 %1205 }
 0x896   :  { %1209 = vst.msk [vmem:[#allocation7] sm:$0x1] %vm1208_vm5, %v1206_v43 }
 0x897   :  { %1376 = shalt.err (!%p1373_p6)
}
 0x898   :  { %s1377_s2 = scalar_lea.hbm %s1821_s7, 16 }
 0x899   :  { %p1378_p7 = scmp.ne.s32.totalorder %s1821_s7, %s1377_s2  ;;  %p1381_p8 = scmp.lt.u32.totalorder %s1377_s2, %s1821_s7 }
 0x89b   :  { %p1383_p9 = pnand %p1381_p8, %p1378_p7 }
 0x89d   :  { %1386 = shalt.err (!%p1383_p9)
}
 0x89e   :  { %1219 = dma.vmem_to_hbm [thread:$0]  %s1217_s0, 16, %s1821_s7, [#allocation4]  }
 0x89f   :  { %1391 = dma.done.wait [#allocation4], 16  }
 0x8a0   :  { %1392 = vsyncadd [#allocation4], 4294967280 }
 0x8a1   :  { %1223 = vsyncpa [#allocation3], 1 }
 0x8a2   :  { %1224 = vsyncpa [#allocation6], 1 }
 0x8a3   :  { %1225 = vsyncpa [#allocation4], 1 }

</bundles_post_ra>
